<compile_context>
chip_gen: v7x
topology: tpu7x:2x2x1
jax: 0.10.0
libtpu: 0.0.40
codegen_flags: <defaults>
</compile_context>

<pallas_src>
import functools

import jax
import jax.numpy as jnp
from jax.experimental import pallas as pl
from jax.experimental.pallas import tpu as pltpu

DEPTH = 5  # matches the module default


def gnn_kernel(x_ref, adj_ref, pool_ref,
               wp_ref, bp_ref,
               wg_ref, bg_ref,
               ws_ref, bs_ref, alpha_ref,
               out_ref,
               h_ref, hw_ref, acc_ref,
               *, adj_resident):
    l = pl.program_id(0)   # layer
    r = pl.program_id(1)   # output row tile of Anorm @ (h W)
    k = pl.program_id(2)   # reduction (column) tile of Anorm
    nl = pl.num_programs(0)
    nr = pl.num_programs(1)
    nk = pl.num_programs(2)

    tm = acc_ref.shape[0]                 # TM == TK by construction
    roff = pl.multiple_of(r * tm, tm)
    koff = pl.multiple_of(k * tm, tm)

    # --- one-time projection: h = relu(x @ Wp + bp), distributed over k tiles ---
    @pl.when((l == 0) & (r == 0))
    def _():
        h0 = jnp.dot(x_ref[pl.ds(koff, tm), :], wp_ref[...],
                     preferred_element_type=jnp.float32)
        h_ref[pl.ds(koff, tm), :] = jnp.maximum(h0 + bp_ref[...],
                                                0.0).astype(h_ref.dtype)

    # --- per-layer hw = h @ Wg[l], distributed over the k steps of row tile 0
    #     so it overlaps the adjacency stream (no layer-start bubble).  Each
    #     chunk is computed from the previous layer's h before that row block
    #     of h is overwritten (serial grid, in-trace ordering). ---
    @pl.when(r == 0)
    def _():
        hw = jnp.dot(h_ref[pl.ds(koff, tm), :], wg_ref[0],
                     preferred_element_type=jnp.float32)
        hw_ref[pl.ds(koff, tm), :] = hw.astype(hw_ref.dtype)

    # --- accumulate this row tile of Anorm @ hw over the k axis ---
    @pl.when(k == 0)
    def _():
        acc_ref[...] = jnp.zeros_like(acc_ref)

    if adj_resident:
        a_tile = adj_ref[k, pl.ds(roff, tm), :]      # VMEM-resident adjacency
    else:
        a_tile = adj_ref[0]                          # streamed (TM, TK) tile
    acc_ref[...] += jnp.dot(a_tile, hw_ref[pl.ds(koff, tm), :],
                            preferred_element_type=jnp.float32)

    # --- row-tile epilogue: + bias, relu for all but the last GCN layer ---
    @pl.when(k == nk - 1)
    def _():
        hn = acc_ref[...] + bg_ref[0]

        @pl.when(l < nl - 1)
        def _():
            h_ref[pl.ds(roff, tm), :] = jnp.maximum(hn, 0.0).astype(h_ref.dtype)

        @pl.when(l == nl - 1)
        def _():
            h_ref[pl.ds(roff, tm), :] = hn.astype(h_ref.dtype)

    # --- final epilogue: global_add_pool + sparsify (Linear + PReLU) ---
    @pl.when((l == nl - 1) & (r == nr - 1) & (k == nk - 1))
    def _():
        readout = jnp.dot(pool_ref[...], h_ref[...],
                          preferred_element_type=jnp.float32)
        z = jnp.dot(readout.astype(jnp.bfloat16), ws_ref[...],
                    preferred_element_type=jnp.float32) + bs_ref[...]
        alpha = alpha_ref[0, 0]
        out_ref[...] = jnp.where(z > 0.0, z, alpha * z)


def _round_up(v, m):
    return (v + m - 1) // m * m


def _vmem_budget_bytes():
    """Generation-specific scoped-VMEM budget (~75% of physical capacity)."""
    cap = 128 * 1024 * 1024
    try:
        cap = int(getattr(pltpu.get_tpu_info(), "vmem_capacity_bytes", cap))
    except Exception:
        pass
    return (cap * 3) // 4        # ~96 MiB on v5e/v6e, ~48 MiB on v7x


def gnn_forward(x, adj, pool, wp, bp, wg, bg, ws, bs, alpha,
                *, tile=512, adj_resident=None):
    N, F = x.shape
    G = pool.shape[0]
    depth, hid, _ = wg.shape
    rout = ws.shape[1]

    # Lane-dense padding of hidden / readout dims (zeros propagate as zeros).
    H = _round_up(hid, 128)
    R = _round_up(rout, 128)

    # Row / reduction tile of the adjacency; N is zero-padded up to a tile
    # multiple (exact: padded adj rows/cols and pool cols are zero).
    TM = min(_round_up(tile, 128), _round_up(N, 128))
    Np = _round_up(N, TM)
    nr = nk = Np // TM

    bf = jnp.bfloat16
    x_p = jnp.zeros((Np, F), bf).at[:N, :].set(x.astype(bf))
    adj_p = jnp.zeros((Np, Np), jnp.float32).at[:N, :N].set(adj).astype(bf)
    pool_p = jnp.zeros((G, Np), bf).at[:, :N].set(pool.astype(bf))
    wp_p = jnp.zeros((F, H), bf).at[:, :hid].set(wp.astype(bf))
    bp_p = jnp.zeros((1, H), jnp.float32).at[:, :hid].set(bp)
    wg_p = jnp.zeros((depth, H, H), bf).at[:, :hid, :hid].set(wg.astype(bf))
    bg_p = jnp.zeros((depth, 1, H), jnp.float32).at[:, 0, :hid].set(bg)
    ws_p = jnp.zeros((H, R), bf).at[:hid, :rout].set(ws.astype(bf))
    bs_p = jnp.zeros((1, R), jnp.float32).at[:, :rout].set(bs)
    alpha_p = jnp.asarray(alpha, jnp.float32).reshape(1, 1)

    # k-major adjacency layout (nk, Np, TK): the reduction-tile index is a
    # leading dim, so the kernel never needs a dynamic lane-dimension slice and
    # streamed (1, TM, TK) blocks are contiguous HBM slabs.
    adj3 = adj_p.reshape(Np, nk, TM).transpose(1, 0, 2)

    vmem_limit = _vmem_budget_bytes()
    # Conservative usage estimate (double buffers counted for pipelined blocks).
    fixed = (2 * Np * H * 2                      # h + hw scratch (bf16)
             + TM * H * 4                        # row-tile accumulator (f32)
             + Np * F * 2 + G * Np * 2           # resident x, pool
             + F * H * 2 + H * 4                 # Wp, bp
             + 2 * (H * H * 2 + H * 4)           # Wg[l], bg[l] (double-buffered)
             + H * R * 2 + R * 4 + 2 * G * R * 4)  # Ws, bs, out
    if adj_resident is None:
        adj_resident = fixed + 2 * Np * Np * 2 <= (vmem_limit * 9) // 10

    if adj_resident:
        # Fully VMEM-resident adjacency: its HBM traffic is paid once, not
        # once per layer.
        adj_spec = pl.BlockSpec((nk, Np, TM), lambda l, r, k: (0, 0, 0))
    else:
        # Streamed (TM, TK) tiles, auto double-buffered by the pipeline.
        adj_spec = pl.BlockSpec((1, TM, TM), lambda l, r, k: (k, r, 0))

    kernel = functools.partial(gnn_kernel, adj_resident=bool(adj_resident))

    out = pl.pallas_call(
        kernel,
        out_shape=jax.ShapeDtypeStruct((G, R), jnp.float32),
        grid_spec=pltpu.PrefetchScalarGridSpec(
            num_scalar_prefetch=0,
            grid=(depth, nr, nk),
            in_specs=[
                pl.BlockSpec((Np, F), lambda l, r, k: (0, 0)),        # x (resident)
                adj_spec,                                             # adjacency
                pl.BlockSpec((G, Np), lambda l, r, k: (0, 0)),        # pool (resident)
                pl.BlockSpec((F, H), lambda l, r, k: (0, 0)),         # Wp
                pl.BlockSpec((1, H), lambda l, r, k: (0, 0)),         # bp
                pl.BlockSpec((1, H, H), lambda l, r, k: (l, 0, 0)),   # Wg[l]
                pl.BlockSpec((1, 1, H), lambda l, r, k: (l, 0, 0)),   # bg[l]
                pl.BlockSpec((H, R), lambda l, r, k: (0, 0)),         # Ws
                pl.BlockSpec((1, R), lambda l, r, k: (0, 0)),         # bs
                pl.BlockSpec(memory_space=pltpu.MemorySpace.SMEM),    # PReLU alpha
            ],
            out_specs=pl.BlockSpec((G, R), lambda l, r, k: (0, 0)),
            scratch_shapes=[
                pltpu.VMEM((Np, H), jnp.bfloat16),   # h (resident node features)
                pltpu.VMEM((Np, H), jnp.bfloat16),   # hw = h @ Wg[l]
                pltpu.VMEM((TM, H), jnp.float32),    # row-tile accumulator
            ],
        ),
        compiler_params=pltpu.CompilerParams(
            # layers are sequential and h/hw scratch is shared -> serial grid.
            dimension_semantics=("arbitrary", "arbitrary", "arbitrary"),
            vmem_limit_bytes=int(vmem_limit),
        ),
    )(x_p, adj3, pool_p, wp_p, bp_p, wg_p, bg_p, ws_p, bs_p, alpha_p)

    return out[:, :rout]


def gcn_norm_dense(edge_index, num_nodes):
    """Dense D^-1/2 (A+I) D^-1/2 matching PyG GCNConv's gcn_norm."""
    src, dst = edge_index
    A = jnp.zeros((num_nodes, num_nodes), jnp.float32)
    A = A.at[dst, src].set(1.0)                          # message src -> dst
    A = A + jnp.eye(num_nodes, dtype=jnp.float32)        # add self loops
    deg = A.sum(axis=1)
    dinv = jnp.where(deg > 0, 1.0 / jnp.sqrt(deg), 0.0)
    return dinv[:, None] * A * dinv[None, :]


def one_hot_pool(batch, num_graphs):
    return (batch[None, :] == jnp.arange(num_graphs)[:, None]).astype(jnp.float32)


if __name__ == "__main__":
    # Small shapes consistent with the module (scaled down), but big enough to
    # exercise >1 row tile and >1 reduction tile (grid = (5, 2, 2)).
    NODE_IN = 16        # node_in_feats
    HID = 32            # node_hid_feats (padded to 128 lanes inside the wrapper)
    READOUT = 64        # readout_feats (padded to 128 lanes inside the wrapper)
    NODES_PER_GRAPH = 128
    NUM_GRAPHS = 2
    N = NODES_PER_GRAPH * NUM_GRAPHS

    key = jax.random.PRNGKey(0)
    ks = jax.random.split(key, 8)

    # Deterministic synthetic graph: two 128-node undirected rings.
    srcs, dsts = [], []
    for g in range(NUM_GRAPHS):
        base = g * NODES_PER_GRAPH
        for i in range(NODES_PER_GRAPH):
            a = base + i
            b = base + (i + 1) % NODES_PER_GRAPH
            srcs += [a, b]
            dsts += [b, a]
    edge_index = jnp.array([srcs, dsts], dtype=jnp.int32)
    batch = jnp.repeat(jnp.arange(NUM_GRAPHS, dtype=jnp.int32), NODES_PER_GRAPH)

    # Node features + deterministic parameters.
    x = jax.random.normal(ks[0], (N, NODE_IN), dtype=jnp.float32)
    wp = 0.1 * jax.random.normal(ks[1], (NODE_IN, HID), dtype=jnp.float32)
    bp = 0.1 * jax.random.normal(ks[2], (1, HID), dtype=jnp.float32)
    wg = 0.1 * jax.random.normal(ks[3], (DEPTH, HID, HID), dtype=jnp.float32)
    bg = 0.1 * jax.random.normal(ks[4], (DEPTH, HID), dtype=jnp.float32)
    ws = 0.1 * jax.random.normal(ks[5], (HID, READOUT), dtype=jnp.float32)
    bs = 0.1 * jax.random.normal(ks[6], (1, READOUT), dtype=jnp.float32)
    alpha = jnp.full((1, 1), 0.25, dtype=jnp.float32)     # PReLU default init

    adj = gcn_norm_dense(edge_index, N)                   # [N, N]
    pool = one_hot_pool(batch, NUM_GRAPHS)                # [G, N]

    # Exercise both adjacency modes with a small (128) tile so the grid has
    # multiple row / reduction tiles (production default tile is 512).
    out_res = gnn_forward(x, adj, pool, wp, bp, wg, bg, ws, bs, alpha,
                          tile=128)                        # auto: VMEM-resident adj
    out_str = gnn_forward(x, adj, pool, wp, bp, wg, bg, ws, bs, alpha,
                          tile=128, adj_resident=False)    # streamed adj tiles
    out_res = jax.block_until_ready(out_res)
    out_str = jax.block_until_ready(out_str)

    # Pure-JAX reference of the same math with matching bf16 rounding points
    # (bf16 matmul operands, f32 accumulation, bf16-stored h and hw).
    bfr = lambda a: a.astype(jnp.bfloat16).astype(jnp.float32)
    hi = jax.lax.Precision.HIGHEST
    mm = lambda a, b: jnp.dot(bfr(a), bfr(b), precision=hi)

    h_ref = bfr(jnp.maximum(mm(x, wp) + bp, 0.0))         # h stored bf16 in-kernel
    adj_q = bfr(adj)
    for i in range(DEPTH):
        hw_ref = bfr(mm(h_ref, wg[i]))                    # hw stored bf16 in-kernel
        hn = jnp.dot(adj_q, hw_ref, precision=hi) + bg[i][None, :]
        if i < DEPTH - 1:
            hn = jnp.maximum(hn, 0.0)
        h_ref = bfr(hn)
    r_ref = mm(pool, h_ref)
    z_ref = mm(r_ref, ws) + bs
    ref = jnp.where(z_ref > 0, z_ref, 0.25 * z_ref)

    for out in (out_res, out_str):
        assert out.shape == (NUM_GRAPHS, READOUT)
        assert jnp.allclose(out, ref, atol=1e-2, rtol=1e-2), \
            float(jnp.max(jnp.abs(out - ref)))

    print("KERNEL_OK")
</pallas_src>

<mosaic_0001>
module attributes {stable_mosaic.version = 11 : i64} {
  func.func @gnn_kernel(%arg0: i32, %arg1: i32, %arg2: i32, %arg3: memref<256x16xbf16, #tpu.memory_space<vmem>>, %arg4: memref<2x256x128xbf16, #tpu.memory_space<vmem>>, %arg5: memref<2x256xbf16, #tpu.memory_space<vmem>>, %arg6: memref<16x128xbf16, #tpu.memory_space<vmem>>, %arg7: memref<1x128xf32, #tpu.memory_space<vmem>>, %arg8: memref<1x128x128xbf16, #tpu.memory_space<vmem>>, %arg9: memref<1x1x128xf32, #tpu.memory_space<vmem>>, %arg10: memref<128x128xbf16, #tpu.memory_space<vmem>>, %arg11: memref<1x128xf32, #tpu.memory_space<vmem>>, %arg12: memref<1x1xf32, #tpu.memory_space<smem>>, %arg13: memref<2x128xf32, #tpu.memory_space<vmem>>, %arg14: memref<256x128xbf16, #tpu.memory_space<vmem>>, %arg15: memref<256x128xbf16, #tpu.memory_space<vmem>>, %arg16: memref<128x128xf32, #tpu.memory_space<vmem>>) attributes {dimension_semantics = [#tpu.dimension_semantics<arbitrary>, #tpu.dimension_semantics<arbitrary>, #tpu.dimension_semantics<arbitrary>], iteration_bounds = array<i64: 5, 2, 2>, scalar_prefetch = 0 : i64, scratch_operands = 3 : i64, tpu.core_type = #tpu.core_type<tc>, window_params = [{pipeline_mode = #tpu.pipeline_mode<synchronous>, transform_indices = @transform_0, window_bounds = array<i64: 256, 16>}, {pipeline_mode = #tpu.pipeline_mode<synchronous>, transform_indices = @transform_1, window_bounds = array<i64: 2, 256, 128>}, {pipeline_mode = #tpu.pipeline_mode<synchronous>, transform_indices = @transform_2, window_bounds = array<i64: 2, 256>}, {pipeline_mode = #tpu.pipeline_mode<synchronous>, transform_indices = @transform_3, window_bounds = array<i64: 16, 128>}, {pipeline_mode = #tpu.pipeline_mode<synchronous>, transform_indices = @transform_4, window_bounds = array<i64: 1, 128>}, {transform_indices = @transform_5, window_bounds = array<i64: 1, 128, 128>}, {transform_indices = @transform_6, window_bounds = array<i64: 1, 1, 128>}, {pipeline_mode = #tpu.pipeline_mode<synchronous>, transform_indices = @transform_7, window_bounds = array<i64: 128, 128>}, {pipeline_mode = #tpu.pipeline_mode<synchronous>, transform_indices = @transform_8, window_bounds = array<i64: 1, 128>}, {transform_indices = @transform_9, window_bounds = array<i64: 1, 1>}, {pipeline_mode = #tpu.pipeline_mode<synchronous>, transform_indices = @transform_10, window_bounds = array<i64: 2, 128>}]} {
    %c128_i32 = arith.constant 128 : i32
    %0 = arith.muli %arg1, %c128_i32 : i32
    %1 = tpu.assume_multiple %0, 128 : i32
    %c128_i32_0 = arith.constant 128 : i32
    %2 = arith.muli %arg2, %c128_i32_0 : i32
    %3 = tpu.assume_multiple %2, 128 : i32
    %c0_i32 = arith.constant 0 : i32
    %4 = arith.cmpi eq, %arg0, %c0_i32 : i32
    %c0_i32_1 = arith.constant 0 : i32
    %5 = arith.cmpi eq, %arg1, %c0_i32_1 : i32
    %6 = arith.andi %4, %5 : i1
    %7 = arith.extui %6 : i1 to i32
    %c0_i32_2 = arith.constant 0 : i32
    %8 = arith.cmpi ne, %7, %c0_i32_2 : i32
    scf.if %8 {
      %35 = arith.index_cast %3 : i32 to index
      %c0_16 = arith.constant 0 : index
      %36 = vector.load %arg3[%35, %c0_16] : memref<256x16xbf16, #tpu.memory_space<vmem>>, vector<128x16xbf16>
      %c0_17 = arith.constant 0 : index
      %c0_18 = arith.constant 0 : index
      %37 = vector.load %arg6[%c0_17, %c0_18] : memref<16x128xbf16, #tpu.memory_space<vmem>>, vector<16x128xbf16>
      %cst_19 = arith.constant dense<0.000000e+00> : vector<128x128xf32>
      %38 = tpu.matmul %36, %37, %cst_19 {dimension_numbers = #tpu.dot_dimension_numbers<[1], [0], [0], [1], [0, 0, 1, 1], [], []>} : vector<128x16xbf16>, vector<16x128xbf16>, vector<128x128xf32> -> vector<128x128xf32>
      %c0_20 = arith.constant 0 : index
      %c0_21 = arith.constant 0 : index
      %39 = vector.load %arg7[%c0_20, %c0_21] : memref<1x128xf32, #tpu.memory_space<vmem>>, vector<1x128xf32>
      %40 = vector.broadcast %39 : vector<1x128xf32> to vector<128x128xf32>
      %41 = arith.addf %38, %40 : vector<128x128xf32>
      %cst_22 = arith.constant 0.000000e+00 : f32
      %42 = vector.broadcast %cst_22 : f32 to vector<128x128xf32>
      %43 = arith.maximumf %41, %42 : vector<128x128xf32>
      %44 = arith.truncf %43 : vector<128x128xf32> to vector<128x128xbf16>
      %45 = arith.index_cast %3 : i32 to index
      %c0_23 = arith.constant 0 : index
      %46 = vector.load %arg14[%45, %c0_23] : memref<256x128xbf16, #tpu.memory_space<vmem>>, vector<128x128xbf16>
      tpu.vector_store %arg14[%45, %c0_23], %44 {strides = array<i32>} : memref<256x128xbf16, #tpu.memory_space<vmem>>, vector<128x128xbf16>,
    } else {
    }
    %c0_i32_3 = arith.constant 0 : i32
    %9 = arith.cmpi eq, %arg1, %c0_i32_3 : i32
    %10 = arith.extui %9 : i1 to i32
    %c0_i32_4 = arith.constant 0 : i32
    %11 = arith.cmpi ne, %10, %c0_i32_4 : i32
    scf.if %11 {
      %35 = arith.index_cast %3 : i32 to index
      %c0_16 = arith.constant 0 : index
      %36 = vector.load %arg14[%35, %c0_16] : memref<256x128xbf16, #tpu.memory_space<vmem>>, vector<128x128xbf16>
      %c0_17 = arith.constant 0 : index
      %c0_18 = arith.constant 0 : index
      %c0_19 = arith.constant 0 : index
      %37 = vector.load %arg8[%c0_17, %c0_18, %c0_19] : memref<1x128x128xbf16, #tpu.memory_space<vmem>>, vector<1x128x128xbf16>
      %38 = vector.shape_cast %37 : vector<1x128x128xbf16> to vector<128x128xbf16>
      %cst_20 = arith.constant dense<0.000000e+00> : vector<128x128xf32>
      %39 = tpu.matmul %36, %38, %cst_20 {dimension_numbers = #tpu.dot_dimension_numbers<[1], [0], [0], [1], [0, 0, 1, 1], [], []>} : vector<128x128xbf16>, vector<128x128xbf16>, vector<128x128xf32> -> vector<128x128xf32>
      %40 = arith.truncf %39 : vector<128x128xf32> to vector<128x128xbf16>
      %41 = arith.index_cast %3 : i32 to index
      %c0_21 = arith.constant 0 : index
      %42 = vector.load %arg15[%41, %c0_21] : memref<256x128xbf16, #tpu.memory_space<vmem>>, vector<128x128xbf16>
      tpu.vector_store %arg15[%41, %c0_21], %40 {strides = array<i32>} : memref<256x128xbf16, #tpu.memory_space<vmem>>, vector<128x128xbf16>,
    } else {
    }
    %c0_i32_5 = arith.constant 0 : i32
    %12 = arith.cmpi eq, %arg2, %c0_i32_5 : i32
    %13 = arith.extui %12 : i1 to i32
    %c0_i32_6 = arith.constant 0 : i32
    %14 = arith.cmpi ne, %13, %c0_i32_6 : i32
    scf.if %14 {
      %cst_16 = arith.constant 0.000000e+00 : f32
      %35 = vector.broadcast %cst_16 : f32 to vector<128x128xf32>
      %c0_17 = arith.constant 0 : index
      %c0_18 = arith.constant 0 : index
      %36 = vector.load %arg16[%c0_17, %c0_18] : memref<128x128xf32, #tpu.memory_space<vmem>>, vector<128x128xf32>
      tpu.vector_store %arg16[%c0_17, %c0_18], %35 {strides = array<i32>} : memref<128x128xf32, #tpu.memory_space<vmem>>, vector<128x128xf32>,
    } else {
    }
    %15 = arith.index_cast %arg2 : i32 to index
    %16 = arith.index_cast %1 : i32 to index
    %c0 = arith.constant 0 : index
    %17 = vector.load %arg4[%15, %16, %c0] : memref<2x256x128xbf16, #tpu.memory_space<vmem>>, vector<1x128x128xbf16>
    %18 = vector.shape_cast %17 : vector<1x128x128xbf16> to vector<128x128xbf16>
    %c0_7 = arith.constant 0 : index
    %c0_8 = arith.constant 0 : index
    %19 = vector.load %arg16[%c0_7, %c0_8] : memref<128x128xf32, #tpu.memory_space<vmem>>, vector<128x128xf32>
    %20 = arith.index_cast %3 : i32 to index
    %c0_9 = arith.constant 0 : index
    %21 = vector.load %arg15[%20, %c0_9] : memref<256x128xbf16, #tpu.memory_space<vmem>>, vector<128x128xbf16>
    %cst = arith.constant dense<0.000000e+00> : vector<128x128xf32>
    %22 = tpu.matmul %18, %21, %cst {dimension_numbers = #tpu.dot_dimension_numbers<[1], [0], [0], [1], [0, 0, 1, 1], [], []>} : vector<128x128xbf16>, vector<128x128xbf16>, vector<128x128xf32> -> vector<128x128xf32>
    %23 = arith.addf %19, %22 : vector<128x128xf32>
    %c0_10 = arith.constant 0 : index
    %c0_11 = arith.constant 0 : index
    %24 = vector.load %arg16[%c0_10, %c0_11] : memref<128x128xf32, #tpu.memory_space<vmem>>, vector<128x128xf32>
    tpu.vector_store %arg16[%c0_10, %c0_11], %23 {strides = array<i32>} : memref<128x128xf32, #tpu.memory_space<vmem>>, vector<128x128xf32>,
    %c1_i32 = arith.constant 1 : i32
    %25 = arith.cmpi eq, %arg2, %c1_i32 : i32
    %26 = arith.extui %25 : i1 to i32
    %c0_i32_12 = arith.constant 0 : i32
    %27 = arith.cmpi ne, %26, %c0_i32_12 : i32
    scf.if %27 {
      %c0_16 = arith.constant 0 : index
      %c0_17 = arith.constant 0 : index
      %35 = vector.load %arg16[%c0_16, %c0_17] : memref<128x128xf32, #tpu.memory_space<vmem>>, vector<128x128xf32>
      %c0_18 = arith.constant 0 : index
      %c0_19 = arith.constant 0 : index
      %c0_20 = arith.constant 0 : index
      %36 = vector.load %arg9[%c0_18, %c0_19, %c0_20] : memref<1x1x128xf32, #tpu.memory_space<vmem>>, vector<1x1x128xf32>
      %37 = vector.shape_cast %36 : vector<1x1x128xf32> to vector<1x128xf32>
      %38 = vector.broadcast %37 : vector<1x128xf32> to vector<128x128xf32>
      %39 = arith.addf %35, %38 : vector<128x128xf32>
      %c4_i32_21 = arith.constant 4 : i32
      %40 = arith.cmpi slt, %arg0, %c4_i32_21 : i32
      %41 = arith.extui %40 : i1 to i32
      %c0_i32_22 = arith.constant 0 : i32
      %42 = arith.cmpi ne, %41, %c0_i32_22 : i32
      scf.if %42 {
        %cst_25 = arith.constant 0.000000e+00 : f32
        %46 = vector.broadcast %cst_25 : f32 to vector<128x128xf32>
        %47 = arith.maximumf %39, %46 : vector<128x128xf32>
        %48 = arith.truncf %47 : vector<128x128xf32> to vector<128x128xbf16>
        %49 = arith.index_cast %1 : i32 to index
        %c0_26 = arith.constant 0 : index
        %50 = vector.load %arg14[%49, %c0_26] : memref<256x128xbf16, #tpu.memory_space<vmem>>, vector<128x128xbf16>
        tpu.vector_store %arg14[%49, %c0_26], %48 {strides = array<i32>} : memref<256x128xbf16, #tpu.memory_space<vmem>>, vector<128x128xbf16>,
      } else {
      }
      %c4_i32_23 = arith.constant 4 : i32
      %43 = arith.cmpi eq, %arg0, %c4_i32_23 : i32
      %44 = arith.extui %43 : i1 to i32
      %c0_i32_24 = arith.constant 0 : i32
      %45 = arith.cmpi ne, %44, %c0_i32_24 : i32
      scf.if %45 {
        %46 = arith.truncf %39 : vector<128x128xf32> to vector<128x128xbf16>
        %47 = arith.index_cast %1 : i32 to index
        %c0_25 = arith.constant 0 : index
        %48 = vector.load %arg14[%47, %c0_25] : memref<256x128xbf16, #tpu.memory_space<vmem>>, vector<128x128xbf16>
        tpu.vector_store %arg14[%47, %c0_25], %46 {strides = array<i32>} : memref<256x128xbf16, #tpu.memory_space<vmem>>, vector<128x128xbf16>,
      } else {
      }
    } else {
    }
    %c4_i32 = arith.constant 4 : i32
    %28 = arith.cmpi eq, %arg0, %c4_i32 : i32
    %c1_i32_13 = arith.constant 1 : i32
    %29 = arith.cmpi eq, %arg1, %c1_i32_13 : i32
    %30 = arith.andi %28, %29 : i1
    %c1_i32_14 = arith.constant 1 : i32
    %31 = arith.cmpi eq, %arg2, %c1_i32_14 : i32
    %32 = arith.andi %30, %31 : i1
    %33 = arith.extui %32 : i1 to i32
    %c0_i32_15 = arith.constant 0 : i32
    %34 = arith.cmpi ne, %33, %c0_i32_15 : i32
    scf.if %34 {
      %c0_16 = arith.constant 0 : index
      %c0_17 = arith.constant 0 : index
      %35 = vector.load %arg5[%c0_16, %c0_17] : memref<2x256xbf16, #tpu.memory_space<vmem>>, vector<2x256xbf16>
      %c0_18 = arith.constant 0 : index
      %c0_19 = arith.constant 0 : index
      %36 = vector.load %arg14[%c0_18, %c0_19] : memref<256x128xbf16, #tpu.memory_space<vmem>>, vector<256x128xbf16>
      %cst_20 = arith.constant dense<0.000000e+00> : vector<2x128xf32>
      %37 = tpu.matmul %35, %36, %cst_20 {dimension_numbers = #tpu.dot_dimension_numbers<[1], [0], [0], [1], [0, 0, 1, 1], [], []>} : vector<2x256xbf16>, vector<256x128xbf16>, vector<2x128xf32> -> vector<2x128xf32>
      %38 = arith.truncf %37 : vector<2x128xf32> to vector<2x128xbf16>
      %c0_21 = arith.constant 0 : index
      %c0_22 = arith.constant 0 : index
      %39 = vector.load %arg10[%c0_21, %c0_22] : memref<128x128xbf16, #tpu.memory_space<vmem>>, vector<128x128xbf16>
      %cst_23 = arith.constant dense<0.000000e+00> : vector<2x128xf32>
      %40 = tpu.matmul %38, %39, %cst_23 {dimension_numbers = #tpu.dot_dimension_numbers<[1], [0], [0], [1], [0, 0, 1, 1], [], []>} : vector<2x128xbf16>, vector<128x128xbf16>, vector<2x128xf32> -> vector<2x128xf32>
      %c0_24 = arith.constant 0 : index
      %c0_25 = arith.constant 0 : index
      %41 = vector.load %arg11[%c0_24, %c0_25] : memref<1x128xf32, #tpu.memory_space<vmem>>, vector<1x128xf32>
      %42 = vector.broadcast %41 : vector<1x128xf32> to vector<2x128xf32>
      %43 = arith.addf %40, %42 : vector<2x128xf32>
      %c0_26 = arith.constant 0 : index
      %c0_27 = arith.constant 0 : index
      %44 = memref.load %arg12[%c0_26, %c0_27] : memref<1x1xf32, #tpu.memory_space<smem>>
      %cst_28 = arith.constant 0.000000e+00 : f32
      %45 = vector.broadcast %cst_28 : f32 to vector<2x128xf32>
      %46 = arith.cmpf ogt, %43, %45 : vector<2x128xf32>
      %47 = vector.broadcast %44 : f32 to vector<2x128xf32>
      %48 = arith.mulf %47, %43 : vector<2x128xf32>
      %49 = arith.select %46, %43, %48 : vector<2x128xi1>, vector<2x128xf32>
      %c0_29 = arith.constant 0 : index
      %c0_30 = arith.constant 0 : index
      %50 = vector.load %arg13[%c0_29, %c0_30] : memref<2x128xf32, #tpu.memory_space<vmem>>, vector<2x128xf32>
      tpu.vector_store %arg13[%c0_29, %c0_30], %49 {strides = array<i32>} : memref<2x128xf32, #tpu.memory_space<vmem>>, vector<2x128xf32>,
    } else {
    }
    return
  }
  func.func @transform_0(%arg0: i32, %arg1: i32, %arg2: i32) -> (i32, i32) {
    %c0_i32 = arith.constant 0 : i32
    %c0_i32_0 = arith.constant 0 : i32
    %c0_i32_1 = arith.constant 0 : i32
    return %c0_i32, %c0_i32_0 : i32, i32
  }
  func.func @transform_1(%arg0: i32, %arg1: i32, %arg2: i32) -> (i32, i32, i32) {
    %c0_i32 = arith.constant 0 : i32
    %c0_i32_0 = arith.constant 0 : i32
    %c0_i32_1 = arith.constant 0 : i32
    %c0_i32_2 = arith.constant 0 : i32
    return %c0_i32, %c0_i32_0, %c0_i32_1 : i32, i32, i32
  }
  func.func @transform_2(%arg0: i32, %arg1: i32, %arg2: i32) -> (i32, i32) {
    %c0_i32 = arith.constant 0 : i32
    %c0_i32_0 = arith.constant 0 : i32
    %c0_i32_1 = arith.constant 0 : i32
    return %c0_i32, %c0_i32_0 : i32, i32
  }
  func.func @transform_3(%arg0: i32, %arg1: i32, %arg2: i32) -> (i32, i32) {
    %c0_i32 = arith.constant 0 : i32
    %c0_i32_0 = arith.constant 0 : i32
    %c0_i32_1 = arith.constant 0 : i32
    return %c0_i32, %c0_i32_0 : i32, i32
  }
  func.func @transform_4(%arg0: i32, %arg1: i32, %arg2: i32) -> (i32, i32) {
    %c0_i32 = arith.constant 0 : i32
    %c0_i32_0 = arith.constant 0 : i32
    %c0_i32_1 = arith.constant 0 : i32
    return %c0_i32, %c0_i32_0 : i32, i32
  }
  func.func @transform_5(%arg0: i32, %arg1: i32, %arg2: i32) -> (i32, i32, i32) {
    %c0_i32 = arith.constant 0 : i32
    %c0_i32_0 = arith.constant 0 : i32
    %c0_i32_1 = arith.constant 0 : i32
    return %arg0, %c0_i32, %c0_i32_0 : i32, i32, i32
  }
  func.func @transform_6(%arg0: i32, %arg1: i32, %arg2: i32) -> (i32, i32, i32) {
    %c0_i32 = arith.constant 0 : i32
    %c0_i32_0 = arith.constant 0 : i32
    %c0_i32_1 = arith.constant 0 : i32
    return %arg0, %c0_i32, %c0_i32_0 : i32, i32, i32
  }
  func.func @transform_7(%arg0: i32, %arg1: i32, %arg2: i32) -> (i32, i32) {
    %c0_i32 = arith.constant 0 : i32
    %c0_i32_0 = arith.constant 0 : i32
    %c0_i32_1 = arith.constant 0 : i32
    return %c0_i32, %c0_i32_0 : i32, i32
  }
  func.func @transform_8(%arg0: i32, %arg1: i32, %arg2: i32) -> (i32, i32) {
    %c0_i32 = arith.constant 0 : i32
    %c0_i32_0 = arith.constant 0 : i32
    %c0_i32_1 = arith.constant 0 : i32
    return %c0_i32, %c0_i32_0 : i32, i32
  }
  func.func @transform_9(%arg0: i32, %arg1: i32, %arg2: i32) -> (i32, i32) {
    %c0_i32 = arith.constant 0 : i32
    %c0_i32_0 = arith.constant 0 : i32
    %c0_i32_1 = arith.constant 0 : i32
    return %c0_i32, %c0_i32_0 : i32, i32
  }
  func.func @transform_10(%arg0: i32, %arg1: i32, %arg2: i32) -> (i32, i32) {
    %c0_i32 = arith.constant 0 : i32
    %c0_i32_0 = arith.constant 0 : i32
    %c0_i32_1 = arith.constant 0 : i32
    return %c0_i32, %c0_i32_0 : i32, i32
  }
}

</mosaic_0001>

<bundles_post_ra>
// kernel: tpu_custom_call.1
= control target key start
LH: loop header
LB: loop body
LE: loop exit
PB: predicated region body
PF: predicated region fallthrough
CT: control target
= control target key end

     0   :  { %s3207_s0 = inlined_call_operand.hbm [shape: bf16[256,16], index: 0, kind: input, shape index: {}]   ;;  %s3208_s1 = inlined_call_operand.hbm [shape: bf16[2,256,128], index: 1, kind: input, shape index: {}]   ;;  %s3209_s2 = inlined_call_operand.hbm [shape: bf16[2,256], index: 2, kind: input, shape index: {}]   ;;  %s3210_s3 = inlined_call_operand.hbm [shape: bf16[16,128], index: 3, kind: input, shape index: {}]   ;;  %s3211_s4 = inlined_call_operand.hbm [shape: f32[1,128], index: 4, kind: input, shape index: {}]   ;;  %s3212_s5 = inlined_call_operand.hbm [shape: bf16[5,128,128], index: 5, kind: input, shape index: {}]   ;;  %s3213_s6 = inlined_call_operand.hbm [shape: f32[5,1,128], index: 6, kind: input, shape index: {}]   ;;  %s3214_s7 = inlined_call_operand.hbm [shape: bf16[128,128], index: 7, kind: input, shape index: {}]   ;;  %s3215_s8 = inlined_call_operand.hbm [shape: f32[1,128], index: 8, kind: input, shape index: {}]   ;;  %s3216_s9 = inlined_call_operand.<no memory space> [shape: f32[1,1], index: 9, kind: input, shape index: {}]   ;;  %s3217_s10 = inlined_call_operand.hbm [shape: f32[2,128], index: 10, kind: output, shape index: {}]  }
   0x1   :  { %3238 = sst [smem:[#allocation35_spill]] %s3208_s1 }
   0x2   :  { %3239 = sst [smem:[#allocation36_spill]] %s3210_s3 }
   0x3   :  { %3240 = sst [smem:[#allocation37_spill]] %s3212_s5 }
   0x4   :  { %3241 = sst [smem:[#allocation38_spill]] %s3213_s6 }
   0x5   :  { %3242 = sst [smem:[#allocation39_spill]] %s3214_s7 }
   0x6   :  { %3243 = sst [smem:[#allocation40_spill]] %s3215_s8 }
   0x7   :  { %3244 = sst [smem:[#allocation41_spill]] %s3217_s10 }
   0x8   :  { %15 = sst [smem:[#allocation5]] %s3216_s9 }
   0x9   :  { %16 = vsyncpa [#allocation7], 0 }
   0xa   :  { %17 = vsyncpa [#allocation10], 0 }
   0xb   :  { %18 = vsyncpa [#allocation13], 0 }
   0xc   :  { %19 = vsyncpa [#allocation16], 0 }
   0xd   :  { %21 = vsyncpa [#allocation16 + $0x1], 0 }
   0xe   :  { %22 = vsyncpa [#allocation19], 0 }
   0xf   :  { %23 = vsyncpa [#allocation8], 0  ;;  %s2656_s15 = smov 0   ;;  %s2658_s16 = smov 0  }
  0x10   :  { %s2660_s17 = smov 0   ;;  %s2662_s18 = smov 0  }
  0x11   :  { %s2664_s19 = smov 0   ;;  %s2666_s20 = smov 0  }
  0x12   :  { %s2668_s9 = smov 0   ;;  %s2670_s21 = smov 0  }
  0x13   :  { %s2672_s22 = smov 0   ;;  %s2674_s23 = smov 0  }
  0x14 LB: > { %3245 = sst [smem:[#allocation28_spill]] %s2556_s18  ;;  %s2707_s24 = sadd.s32 4294967295, %s2580_s23   ;;  %s2580_s23 = sphi %s2674_s23, %s29_s23   ;;  %s2576_s22 = sphi %s2672_s22, %s3307_s22   ;;  %s2572_s21 = sphi %s2670_s21, %s3306_s21   ;;  %s2568_s9 = sphi %s2668_s9, %s3305_s9   ;;  %s2564_s20 = sphi %s2666_s20, %s3304_s20   ;;  %s2560_s19 = sphi %s2664_s19, %s3303_s19   ;;  %s2556_s18 = sphi %s2662_s18, %s3302_s18   ;;  %s2552_s17 = sphi %s2660_s17, %s3301_s17   ;;  %s2548_s16 = sphi %s2658_s16, %s3300_s16   ;;  %s2544_s15 = sphi %s2656_s15, %s3299_s15  }
  0x15   : > { %3246 = sst [smem:[#allocation29_spill]] %s2560_s19  ;;  %p1691_p0 = scmp.ge.s32.totalorder %s2580_s23, 1 }
  0x16   : > { %3247 = sst [smem:[#allocation30_spill]] %s2564_s20  ;;  %p3229_p1 = scmp.eq.s32.totalorder %s2707_s24, 0 }
  0x17   : > { %p294_p2 = scmp.lt.s32.totalorder %s2580_s23, 21  ;;  %s2582_s26 = smov [#allocation9]  }
  0x18   : > { %s319_s27 = sshll.u32 %s2582_s26, 4  ;;  %s2583_s28 = smov [#allocation12]   ;;  %s2716_s27 = int_to_ptr.vmem [resolvable:$true] %s319_s27 }
  0x19   : > { %p2712_p3 = pnand %p1691_p0, %p294_p2  ;;  %s343_s29 = sshll.u32 %s2583_s28, 4  ;;  %s2726_s29 = int_to_ptr.vmem [resolvable:$true] %s343_s29 }
  0x1a   : > { %s2584_s11 = smov [#allocation18]   ;;  %s3251_s1 = sld [smem:[#allocation35_spill]] }
  0x1b   : > { %s3248_s25 = scalar_select %p2712_p3, 1, 0 }
  0x1c   : > { %p2023_p4 = pneg %p2712_p3  ;;  %s367_s12 = sshll.u32 %s2584_s11, 4  ;;  %s2728_s12 = int_to_ptr.vmem [resolvable:$true] %s367_s12 }
  0x1d   : > { %3249 = sst [smem:[#allocation31_spill]] %s3248_s25 }
  0x1e   : > { %p2722_p5 = pnand %p2023_p4, %p3229_p1 }
  0x20   : > { %s3250_s30 = scalar_select %p2722_p5, 1, 0 }
  0x21   : > { %s2196_s26 = scalar_lea.hbm %s3251_s1, 4096  ;;  %p2738_p7 = pneg %p2722_p5 }
  0x22   : > { %p2197_p6 = scmp.ne.s32.totalorder %s3251_s1, %s2196_s26  ;;  %p2203_p10 = scmp.lt.u32.totalorder %s2196_s26, %s3251_s1 }
  0x24   : > { %p2199_p8 = pnand %p2738_p7, %p2197_p6 }
  0x26   : > { %p2200_p9 = pneg %p2199_p8 }
  0x28   : > { %p2205_p11 = pnand %p2203_p10, %p2200_p9 }
  0x2a   : > { %2208 = shalt.err (!%p2205_p11)
}
  0x2b   : > { %s2209_s10 = scalar_lea.vmem %s2716_s27, 4096  ;;  %p2217_p2 = scmp.lt.s32.totalorder %s2716_s27, %s2716_s27 }
  0x2c   : > { %p2210_p12 = scmp.ne.s32.totalorder %s2716_s27, %s2209_s10  ;;  %p2218_p4 = scmp.lt.s32.totalorder %s2209_s10, %s2209_s10 }
  0x2e   : > { %p2212_p13 = pnand %p2210_p12, %p2738_p7  ;;  %p2219_p6 = por %p2218_p4, %p2217_p2 }
  0x30   : > { %p2213_p0 = pneg %p2212_p13 }
  0x32   : > { %p2220_p8 = pnand %p2219_p6, %p2213_p0 }
  0x34   : > { %2223 = shalt.err (!%p2220_p8)
}
  0x35   : > { %s3224_s20 = smov 64   ;;  %s3226_s18 = smov 4  }
  0x36   : > { %2029 = dma.hbm_to_vmem [thread:$0]  (!%p2722_p5), %s3251_s1, 4096, %s2716_s27, [#allocation10], %s3224_s20, %s3224_s20, %s3226_s18  }
  0x37   : > { %s3253_s3 = sld [smem:[#allocation36_spill]] }
  0x3d   : > { %s2224_s10 = scalar_lea.hbm %s3253_s3, 128 }
  0x3e   : > { %p2225_p9 = scmp.ne.s32.totalorder %s3253_s3, %s2224_s10  ;;  %p2231_p12 = scmp.lt.u32.totalorder %s2224_s10, %s3253_s3 }
  0x40   : > { %p2227_p10 = pnand %p2225_p9, %p2738_p7 }
  0x42   : > { %p2228_p11 = pneg %p2227_p10 }
  0x44   : > { %p2233_p13 = pnand %p2231_p12, %p2228_p11 }
  0x46   : > { %2236 = shalt.err (!%p2233_p13)
}
  0x47   : > { %s2237_s27 = scalar_lea.vmem %s2726_s29, 128  ;;  %p2245_p6 = scmp.lt.s32.totalorder %s2726_s29, %s2726_s29 }
  0x48   : > { %p2238_p0 = scmp.ne.s32.totalorder %s2726_s29, %s2237_s27  ;;  %p2246_p8 = scmp.lt.s32.totalorder %s2237_s27, %s2237_s27 }
  0x4a   : > { %p2240_p2 = pnand %p2238_p0, %p2738_p7  ;;  %p2247_p9 = por %p2246_p8, %p2245_p6 }
  0x4c   : > { %p2241_p4 = pneg %p2240_p2 }
  0x4e   : > { %p2248_p10 = pnand %p2247_p9, %p2241_p4 }
  0x50   : > { %2251 = shalt.err (!%p2248_p10)
}
  0x51   : > { %2035 = dma.hbm_to_vmem [thread:$0]  (!%p2722_p5), %s3253_s3, 128, %s2726_s29, [#allocation13], %s3224_s20, %s3224_s20, %s3226_s18  }
  0x52   : > { %s3254_s7 = sld [smem:[#allocation39_spill]] }
  0x58   : > { %s2252_s13 = scalar_lea.hbm %s3254_s7, 1024 }
  0x59   : > { %p2253_p11 = scmp.ne.s32.totalorder %s3254_s7, %s2252_s13  ;;  %p2259_p0 = scmp.lt.u32.totalorder %s2252_s13, %s3254_s7 }
  0x5b   : > { %p2255_p12 = pnand %p2253_p11, %p2738_p7 }
  0x5d   : > { %p2256_p13 = pneg %p2255_p12 }
  0x5f   : > { %p2261_p2 = pnand %p2259_p0, %p2256_p13 }
  0x61   : > { %2264 = shalt.err (!%p2261_p2)
}
  0x62   : > { %s2265_s29 = scalar_lea.vmem %s2728_s12, 1024  ;;  %p2273_p9 = scmp.lt.s32.totalorder %s2728_s12, %s2728_s12 }
  0x63   : > { %p2266_p4 = scmp.ne.s32.totalorder %s2728_s12, %s2265_s29  ;;  %p2274_p10 = scmp.lt.s32.totalorder %s2265_s29, %s2265_s29 }
  0x65   : > { %p2268_p6 = pnand %p2266_p4, %p2738_p7  ;;  %p2275_p11 = por %p2274_p10, %p2273_p9 }
  0x67   : > { %p2269_p8 = pneg %p2268_p6 }
  0x69   : > { %p2276_p12 = pnand %p2275_p11, %p2269_p8 }
  0x6b   : > { %2279 = shalt.err (!%p2276_p12)
}
  0x6c   : > { %2041 = dma.hbm_to_vmem [thread:$0]  (!%p2722_p5), %s3254_s7, 1024, %s2728_s12, [#allocation19], %s3224_s20, %s3224_s20, %s3226_s18  }
  0x6d   : > { %s41_s8 = sadd.s32 1, %s2568_s9  ;;  %s44_s19 = sadd.s32 1, %s2572_s21 }
  0x6e   : > { %p42_p13 = scmp.ge.s32.totalorder %s41_s8, 2  ;;  %s48_s25 = sadd.s32 1, %s2576_s22 }
  0x6f   : > { %s160_s13 = sadd.s32 1, %s2552_s17  ;;  %p167_p0 = scmp.ne.s32.totalorder %s2552_s17, %s2548_s16 }
  0x70   : > { %s3309_s8 = smov (%p42_p13, %s41_s8), 0  ;;  %s3311_s19 = smov (!%p42_p13, %s44_s19), %s2572_s21 }
  0x71   : > { %3255 = sst [smem:[#allocation32_spill]] %s3309_s8  ;;  %p168_p2 = scmp.eq.s32.totalorder %s2580_s23, 0 }
  0x72   : > { %p46_p4 = scmp.ge.s32.totalorder %s3311_s19, 2  ;;  %p173_p6 = scmp.ne.s32.totalorder %s2548_s16, %s2544_s15 }
  0x73   : > { %p2826_p8 = por %p168_p2, %p167_p0  ;;  %p2059_p9 = scmp.lt.s32.totalorder %s2580_s23, 20 }
  0x74   : > { %s3313_s19 = smov (%p46_p4, %s3311_s19), 0  ;;  %s3315_s25 = smov (!%p46_p4, %s48_s25), %s2576_s22 }
  0x75   : > { %3257 = sst [smem:[#allocation33_spill]] %s3313_s19  ;;  %p2836_p10 = por %p3229_p1, %p173_p6 }
  0x76   : > { %s395_s26 = sand.u32 1, %s2580_s23   ;;  %p50_p11 = scmp.ge.s32.totalorder %s3315_s25, 5 }
  0x77   : > { %s3258_s14 = scalar_select %p2836_p10, 1, 0 }
  0x78   : > { %s3228_s11 = sand.u32 1, %s2552_s17   ;;  %s1778_s15 = sshll.u32 %s2576_s22, 10 }
  0x79   : > { %s3317_s25 = smov (%p50_p11, %s3315_s25), 0  ;;  %s1700_s10 = sshll.u32 %s3228_s11, 6 }
  0x7a   : > { %3259 = sst [smem:[#allocation34_spill]] %s3317_s25  ;;  %s3260_s5 = sld [smem:[#allocation37_spill]] }
  0x7b   : > { %s157_s20 = ssub.s32 %s2576_s22, %s3317_s25  ;;  %s399_s18 = scalar_lea.vmem [#allocation15], %s1700_s10 }
  0x7c   : > { %p158_p12 = scmp.eq.s32.totalorder %s157_s20, 0  ;;  %s406_s1 = sshll.u32 %s399_s18, 4  ;;  %s2854_s1 = int_to_ptr.vmem [resolvable:$true] %s406_s1 }
  0x7d   : > { %p2860_p13 = pnand %p2059_p9, %p2826_p8  ;;  %s2867_s29 = scalar_lea.sflag [#allocation16], %s395_s26 }
  0x7f   : > { %s3261_s3 = scalar_select %p2860_p13, 1, 0 }
  0x80   : > { %s2850_s6 = scalar_lea.hbm %s3260_s5, %s1778_s15  ;;  %p3235_p2 = pneg %p2860_p13 }
  0x81   : > { %s2865_s15 = scalar_select %p158_p12, %s2552_s17, %s160_s13  }
  0x82   : > { %s2280_s27 = scalar_lea.hbm %s2850_s6, 1024  ;;  %s2285_s12 = scalar_lea.hbm %s3260_s5, 5120 }
  0x83   : > { %p2281_p0 = scmp.ne.s32.totalorder %s2850_s6, %s2280_s27  ;;  %p2286_p8 = scmp.lt.u32.totalorder %s2850_s6, %s3260_s5 }
  0x84   : > { %p2287_p9 = scmp.lt.u32.totalorder %s2285_s12, %s2280_s27  ;;  %p2289_p12 = scmp.lt.u32.totalorder %s2280_s27, %s2850_s6 }
  0x85   : > { %p2283_p4 = pnand %p3235_p2, %p2281_p0 }
  0x86   : > { %p2288_p11 = por %p2287_p9, %p2286_p8 }
  0x87   : > { %p2284_p6 = pneg %p2283_p4 }
  0x88   : > { %p2290_p1 = por %p2289_p12, %p2288_p11 }
  0x8a   : > { %p2291_p10 = pnand %p2290_p1, %p2284_p6 }
  0x8c   : > { %2294 = shalt.err (!%p2291_p10)
}
  0x8d   : > { %s2295_s13 = scalar_lea.vmem %s2854_s1, 1024  ;;  %s2587_s26 = smov [#allocation15]  }
  0x8e   : > { %p2296_p0 = scmp.ne.s32.totalorder %s2854_s1, %s2295_s13  ;;  %s2300_s20 = sshll.u32 %s2587_s26, 4  ;;  %s2301_s20 = int_to_ptr.vmem [resolvable:$false] %s2300_s20 }
  0x8f   : > { %s2302_s11 = scalar_lea.vmem %s2301_s20, 2048  ;;  %p2303_p5 = scmp.lt.s32.totalorder %s2854_s1, %s2301_s20 }
  0x90   : > { %p2298_p4 = pnand %p2296_p0, %p3235_p2  ;;  %p2304_p8 = scmp.lt.s32.totalorder %s2302_s11, %s2295_s13 }
  0x92   : > { %p2299_p3 = pneg %p2298_p4  ;;  %p2305_p9 = por %p2304_p8, %p2303_p5 }
  0x94   : > { %p2306_p11 = pnand %p2305_p9, %p2299_p3 }
  0x96   : > { %2309 = shalt.err (!%p2306_p11)
}
  0x97   : > { %s3262_s27 = smov 4   ;;  %s3263_s18 = smov 64  }
  0x98   : > { %2048 = dma.hbm_to_vmem [thread:$0]  (!%p2860_p13), %s2850_s6, 1024, %s2854_s1, %s2867_s29, %s3263_s18, %s3263_s18, %s3262_s27  }
  0x99   : > { %s2588_s12 = smov [#allocation6]   ;;  %s2589_s26 = smov [#allocation11]  }
  0x9a   : > { %s306_s10 = sshll.u32 %s2588_s12, 4  ;;  %s333_s5 = sshll.u32 %s2589_s26, 4  ;;  %s307_s10 = int_to_ptr.vmem [resolvable:$true] %s306_s10  ;;  %s334_s5 = int_to_ptr.vmem [resolvable:$true] %s333_s5 }
  0x9b   : > { %s2310_s11 = scalar_lea.hbm %s3207_s0, 2048 }
  0x9c   : > { %p2311_p1 = scmp.ne.s32.totalorder %s3207_s0, %s2310_s11  ;;  %p2317_p10 = scmp.lt.u32.totalorder %s2310_s11, %s3207_s0 }
  0x9e   : > { %p2313_p3 = pnand %p2311_p1, %p2738_p7 }
  0xa0   : > { %p2314_p5 = pneg %p2313_p3 }
  0xa2   : > { %p2319_p6 = pnand %p2317_p10, %p2314_p5 }
  0xa4   : > { %2322 = shalt.err (!%p2319_p6)
}
  0xa5   : > { %s2323_s1 = scalar_lea.vmem %s307_s10, 2048  ;;  %p2331_p8 = scmp.lt.s32.totalorder %s307_s10, %s307_s10 }
  0xa6   : > { %p2324_p12 = scmp.ne.s32.totalorder %s307_s10, %s2323_s1  ;;  %p2332_p9 = scmp.lt.s32.totalorder %s2323_s1, %s2323_s1 }
  0xa8   : > { %p2326_p0 = pnand %p2324_p12, %p2738_p7  ;;  %p2333_p11 = por %p2332_p9, %p2331_p8 }
  0xaa   : > { %p2327_p4 = pneg %p2326_p0 }
  0xac   : > { %p2334_p2 = pnand %p2333_p11, %p2327_p4 }
  0xae   : > { %2337 = shalt.err (!%p2334_p2)
}
  0xaf   : > { %p3264_p1 = scmp.ne.s32.totalorder %s3250_s30, 0  ;;  %s2338_s6 = scalar_lea.hbm %s3209_s2, 32 }
  0xb0   : > { %p2339_p3 = scmp.ne.s32.totalorder %s3209_s2, %s2338_s6  ;;  %p2345_p10 = scmp.lt.u32.totalorder %s2338_s6, %s3209_s2 }
  0xb1   : > { %2026 = dma.hbm_to_vmem [thread:$0]  (!%p3264_p1), %s3207_s0, 2048, %s307_s10, [#allocation7], %s3263_s18, %s3263_s18, %s3262_s27  }
  0xb2   : > { %p2341_p2 = pnand %p2339_p3, %p2738_p7 }
  0xb4   : > { %p2342_p5 = pneg %p2341_p2 }
  0xb6   : > { %p2347_p6 = pnand %p2345_p10, %p2342_p5 }
  0xb8   : > { %2350 = shalt.err (!%p2347_p6)
}
  0xb9   : > { %s2351_s11 = scalar_lea.vmem %s334_s5, 32  ;;  %p2359_p8 = scmp.lt.s32.totalorder %s334_s5, %s334_s5 }
  0xba   : > { %p2352_p12 = scmp.ne.s32.totalorder %s334_s5, %s2351_s11  ;;  %p2360_p9 = scmp.lt.s32.totalorder %s2351_s11, %s2351_s11 }
  0xbc   : > { %p2354_p0 = pnand %p2352_p12, %p2738_p7  ;;  %p2361_p11 = por %p2360_p9, %p2359_p8 }
  0xbe   : > { %p2355_p4 = pneg %p2354_p0 }
  0xc0   : > { %p2362_p13 = pnand %p2361_p11, %p2355_p4 }
  0xc2   : > { %2365 = shalt.err (!%p2362_p13)
}
  0xc3   : > { %2032 = dma.hbm_to_vmem [thread:$0]  (!%p3264_p1), %s3209_s2, 32, %s334_s5, [#allocation10]  }
  0xc4   : > { %s2590_s10 = smov [#allocation14]   ;;  %s2591_s7 = smov [#allocation20]  }
  0xc5   : > { %s357_s1 = sshll.u32 %s2590_s10, 4  ;;  %s381_s8 = sshll.u32 %s2591_s7, 4  ;;  %s358_s1 = int_to_ptr.vmem [resolvable:$true] %s357_s1  ;;  %s382_s8 = int_to_ptr.vmem [resolvable:$true] %s381_s8 }
  0xc6   : > { %s2366_s6 = scalar_lea.hbm %s3211_s4, 16 }
  0xc7   : > { %p2367_p13 = scmp.ne.s32.totalorder %s3211_s4, %s2366_s6  ;;  %p2373_p5 = scmp.lt.u32.totalorder %s2366_s6, %s3211_s4 }
  0xc9   : > { %p2369_p3 = pnand %p2367_p13, %p2738_p7 }
  0xcb   : > { %p2370_p2 = pneg %p2369_p3 }
  0xcd   : > { %p2375_p10 = pnand %p2373_p5, %p2370_p2 }
  0xcf   : > { %2378 = shalt.err (!%p2375_p10)
}
  0xd0   : > { %s2379_s5 = scalar_lea.vmem %s358_s1, 16  ;;  %s2386_s11 = scalar_lea.vmem %s358_s1, 32 }
  0xd1   : > { %p2380_p6 = scmp.ne.s32.totalorder %s358_s1, %s2379_s5  ;;  %p2387_p4 = scmp.lt.s32.totalorder %s358_s1, %s358_s1 }
  0xd2   : > { %p2388_p8 = scmp.lt.s32.totalorder %s2386_s11, %s2379_s5 }
  0xd3   : > { %p2382_p12 = pnand %p2380_p6, %p2738_p7 }
  0xd4   : > { %p2389_p9 = por %p2388_p8, %p2387_p4 }
  0xd5   : > { %p2383_p0 = pneg %p2382_p12 }
  0xd7   : > { %p2390_p11 = pnand %p2389_p9, %p2383_p0 }
  0xd9   : > { %2393 = shalt.err (!%p2390_p11)
}
  0xda   : > { %2038 = dma.hbm_to_vmem [thread:$0]  (!%p3264_p1), %s3211_s4, 16, %s358_s1, [#allocation13]  }
  0xdb   : > { %s3265_s19 = sld [smem:[#allocation40_spill]] }
  0xe1   : > { %s3266_s25 = smov %s3265_s19  ;;  %s2394_s6 = scalar_lea.hbm %s3265_s19, 16 }
  0xe2   : > { %p2395_p13 = scmp.ne.s32.totalorder %s3266_s25, %s2394_s6  ;;  %p2401_p5 = scmp.lt.u32.totalorder %s2394_s6, %s3266_s25 }
  0xe4   : > { %p2397_p3 = pnand %p2395_p13, %p2738_p7 }
  0xe6   : > { %p2398_p2 = pneg %p2397_p3 }
  0xe8   : > { %p2403_p10 = pnand %p2401_p5, %p2398_p2 }
  0xea   : > { %2406 = shalt.err (!%p2403_p10)
}
  0xeb   : > { %s2407_s5 = scalar_lea.vmem %s382_s8, 16  ;;  %s2414_s1 = scalar_lea.vmem %s382_s8, 32 }
  0xec   : > { %p2408_p6 = scmp.ne.s32.totalorder %s382_s8, %s2407_s5  ;;  %p2415_p4 = scmp.lt.s32.totalorder %s382_s8, %s382_s8 }
  0xed   : > { %p2416_p8 = scmp.lt.s32.totalorder %s2414_s1, %s2407_s5 }
  0xee   : > { %p2410_p12 = pnand %p2408_p6, %p2738_p7 }
  0xef   : > { %p2417_p9 = por %p2416_p8, %p2415_p4 }
  0xf0   : > { %p2411_p0 = pneg %p2410_p12 }
  0xf2   : > { %p2418_p11 = pnand %p2417_p9, %p2411_p0 }
  0xf4   : > { %2421 = shalt.err (!%p2418_p11)
}
  0xf5   : > { %2044 = dma.hbm_to_vmem [thread:$0]  (!%p3264_p1), %s3266_s25, 16, %s382_s8, [#allocation19]  }
  0xf6   : > { %s1703_s18 = sshll.u32 %s2576_s22, 4  ;;  %s3267_s10 = sand.u32 1, %s2552_s17  }
  0xf7   : > { %s419_s28 = scalar_lea.vmem [#allocation17], %s3267_s10  ;;  %s3268_s12 = sld [smem:[#allocation38_spill]] }
  0xf8   : > { %s426_s7 = sshll.u32 %s419_s28, 4  ;;  %p3269_p13 = scmp.ne.s32.totalorder %s3261_s3, 0  ;;  %s427_s7 = int_to_ptr.vmem [resolvable:$true] %s426_s7 }
  0xfa   : > { %p3270_p3 = pneg %p3269_p13 }
  0xfd   : > { %s424_s26 = scalar_lea.hbm %s3268_s12, %s1703_s18  ;;  %s2427_s5 = scalar_lea.hbm %s3268_s12, 80 }
  0xfe   : > { %s2422_s20 = scalar_lea.hbm %s424_s26, 16  ;;  %p2428_p1 = scmp.lt.u32.totalorder %s424_s26, %s3268_s12 }
  0xff   : > { %p2423_p7 = scmp.ne.s32.totalorder %s424_s26, %s2422_s20  ;;  %p2429_p10 = scmp.lt.u32.totalorder %s2427_s5, %s2422_s20 }
 0x100   : > { %p2431_p12 = scmp.lt.u32.totalorder %s2422_s20, %s424_s26 }
 0x101   : > { %p2425_p2 = pnand %p2423_p7, %p3270_p3  ;;  %p2430_p6 = por %p2429_p10, %p2428_p1 }
 0x103   : > { %p2426_p5 = pneg %p2425_p2  ;;  %p2432_p0 = por %p2431_p12, %p2430_p6 }
 0x105   : > { %p2433_p4 = pnand %p2432_p0, %p2426_p5 }
 0x107   : > { %2436 = shalt.err (!%p2433_p4)
}
 0x108   : > { %s2437_s11 = scalar_lea.vmem %s427_s7, 16  ;;  %p3271_p9 = pmov %p3270_p3 }
 0x109   : > { %p2438_p8 = scmp.ne.s32.totalorder %s427_s7, %s2437_s11  ;;  %s2592_s27 = smov [#allocation17]  }
 0x10a   : > { %s2442_s18 = sshll.u32 %s2592_s27, 4  ;;  %s2443_s18 = int_to_ptr.vmem [resolvable:$false] %s2442_s18 }
 0x10b   : > { %p2440_p11 = pnand %p2438_p8, %p3271_p9  ;;  %s2444_s10 = scalar_lea.vmem %s2443_s18, 32 }
 0x10c   : > { %p2445_p3 = scmp.lt.s32.totalorder %s427_s7, %s2443_s18  ;;  %p2446_p2 = scmp.lt.s32.totalorder %s2444_s10, %s2437_s11 }
 0x10d   : > { %p2441_p7 = pneg %p2440_p11 }
 0x10e   : > { %p2447_p1 = por %p2446_p2, %p2445_p3 }
 0x110   : > { %p2448_p10 = pnand %p2447_p1, %p2441_p7 }
 0x112   : > { %2451 = shalt.err (!%p2448_p10)
}
 0x113   : > { %2051 = dma.hbm_to_vmem [thread:$0]  (!%p3269_p13), %s424_s26, 16, %s427_s7, %s2867_s29  }
 0x114   : > { %s3272_s28 = sld [smem:[#allocation31_spill]] }
 0x11a   : > { %p3273_p5 = scmp.ne.s32.totalorder %s3272_s28, 0 }
 0x11b   : > { %p3274_p6 = scmp.eq.s32.totalorder (!%p3273_p5), %s2707_s24, 0 }
 0x11c   : > { %435 = sbr.rel (%p3273_p5) target bundleno = 1638 (0x666), region = 60 }
 0x123   : > { %2519 = dma.done.wait (%p3274_p6), [#allocation7], 2048   ;;  %p3275_p12 = pmov %p3274_p6 }
 0x124   : > { %p3276_p0 = pmov %p3274_p6 }
 0x125   : > { %2521 = vsyncadd (%p3275_p12), [#allocation7], 4294965248 }
 0x126   : > { %2523 = dma.done.wait (%p3276_p0), [#allocation10], 4128   ;;  %p3277_p4 = pmov %p3276_p0 }
 0x127   : > { %p3278_p8 = pmov %p3276_p0 }
 0x128   : > { %2525 = vsyncadd (%p3277_p4), [#allocation10], 4294963168 }
 0x129   : > { %2527 = dma.done.wait (%p3278_p8), [#allocation13], 144   ;;  %p3279_p13 = pmov %p3276_p0 }
 0x12a   : > { %s457_s3 = sand.u32 1, %s2707_s24   ;;  %s459_s29 = sand.u32 1, %s2548_s16  }
 0x12b   : > { %2529 = vsyncadd (%p3279_p13), [#allocation13], 4294967152  ;;  %s1710_s7 = sshll.u32 %s459_s29, 6  ;;  %s458_s19 = scalar_lea.sflag [#allocation16], %s457_s3 }
 0x12c   : > { %s3010_s6 = scalar_lea.vmem [#allocation15], %s1710_s7  ;;  %p3280_p9 = scmp.ne.s32.totalorder %s3258_s14, 0 }
 0x12e   : > { %2531 = dma.done.wait (%p3280_p9), %s458_s19, 1040  }
 0x12f   : > { %2533 = vsyncadd (%p3280_p9), %s458_s19, 4294966256  ;;  %s3016_s26 = scalar_lea.vmem [#allocation17], %s459_s29  ;;  %p3281_p11 = pmov %p3276_p0 }
 0x130   : > { %p3282_p7 = pmov %p3276_p0 }
 0x131   : > { %2535 = dma.done.wait (%p3281_p11), [#allocation19], 1040  }
 0x132   : > { %2537 = vsyncadd (%p3282_p7), [#allocation19], 4294966256  ;;  %s3283_s20 = sld [smem:[#allocation29_spill]]  ;;  %s3284_s30 = sld [smem:[#allocation28_spill]] }
 0x133   : > { %s3285_s13 = sld [smem:[#allocation30_spill]] }
 0x138   : > { %s3023_s5 = sshll.u32 %s3283_s20, 7  ;;  %s3026_s8 = sshll.u32 %s3284_s30, 7 }
 0x139   : > { %p516_p3 = scmp.eq.s32.totalorder %s3285_s13, 0  ;;  %p517_p2 = scmp.eq.s32.totalorder %s3283_s20, 0 }
 0x13b   : > { %p518_p1 = pnand %p517_p2, %p516_p3 }
 0x13c   : > { %v2163_v0 = vld [vmem:[#allocation12] sm:$0xff] (!%p518_p1)   ;;  %s522_s14 = sshra.s32 (!%p518_p1), %s3026_s8, 3  ;;  %vm597_vm0 = vcmask (!%p518_p1), 130048   ;;  %v1716_v9 = vld [vmem:[#allocation14] ss:$0 sm:$0xff] (!%p518_p1)  ;;  %s743_s27 = sshra.s32 (!%p518_p1), %s3026_s8, 4 }
 0x13d   : > { %521 = sbr.rel (%p518_p1) target bundleno = 552 (0x228), region = 100  ;;  %s1715_s1 = sshll.u32 (!%p518_p1), %s522_s14, 2  ;;  %1851 = vmatprep.subr.bf16.mxu0 (!%p518_p1), %v2163_v0  ;;  %1953 = vmatprep.subr.bf16.mxu1 (!%p518_p1), %v2163_v0 }
 0x13e   : > { %1852 = vmatpush3.bf16.msra.mxu0 (!%p518_p1), %v2163_v0  ;;  %1954 = vmatpush3.bf16.msra.mxu1 (!%p518_p1), %v2163_v0  ;;  %s525_s11 = scalar_lea.vmem (!%p518_p1), [#allocation6], %s1715_s1  ;;  %s1734_s18 = sshll.u32 (!%p518_p1), %s743_s27, 3 }
 0x13f   : > { %v2164_v1 = vld [vmem:[%s525_s11] sm:$0xff] (!%p518_p1)   ;;  %v2166_v3 = vld [vmem:[%s525_s11 + $0x8] sm:$0xff] (!%p518_p1)   ;;  %v2168_v5 = vld [vmem:[%s525_s11 + $0x10] sm:$0xff] (!%p518_p1)   ;;  %s3040_s10 = scalar_lea.vmem (!%p518_p1), [#allocation2], %s1734_s18 }
 0x140   : > { %v2165_v2 = vld [vmem:[%s525_s11 + $0x20] sm:$0xff] (!%p518_p1)   ;;  %1853 = vmatprep.mubr.msk.bf16.mxu0 (!%p518_p1), %vm597_vm0, %v2164_v1  ;;  %v2167_v4 = vld [vmem:[%s525_s11 + $0x28] sm:$0xff] (!%p518_p1)   ;;  %v2169_v6 = vld [vmem:[%s525_s11 + $0x30] sm:$0xff] (!%p518_p1)  }
 0x141   : > { %1861 = vmatprep.mubr.msk.bf16.mxu1 (!%p518_p1), %vm597_vm0, %v2165_v2  ;;  %1854 = vmatmul.mubr.msk.bf16.vlgmr.msra.gmra.mrb[0].mxu0 (!%p518_p1), %vm597_vm0, %v2166_v3  ;;  %v2170_v7 = vld [vmem:[%s525_s11 + $0x18] sm:$0xff] (!%p518_p1)  }
 0x142   : > { %1862 = vmatmul.mubr.msk.bf16.vlgmr.msra.gmra.mrb[0].mxu1 (!%p518_p1), %vm597_vm0, %v2167_v4  ;;  %1857 = vmatprep.mubr.msk.bf16.mxu0 (!%p518_p1), %vm597_vm0, %v2168_v5  ;;  %v2171_v8 = vld [vmem:[%s525_s11 + $0x38] sm:$0xff] (!%p518_p1)  }
 0x143   : > { %1865 = vmatprep.mubr.msk.bf16.mxu1 (!%p518_p1), %vm597_vm0, %v2169_v6 }
 0x149   : > { %1858 = vmatmul.mubr.msk.bf16.gmra.mrb[4].mxu0 %vm597_vm0, %v2170_v7 }
 0x14a   : > { %1866 = vmatmul.mubr.msk.bf16.gmra.mrb[4].mxu1 %vm597_vm0, %v2171_v8 }
 0x214   : > { %v1855_v10 = vpop.f32.mrb[0].mxu0 }
 0x215   : > { %v665_v11 = vadd.f32 %v1855_v10, %v1716_v9  ;;  %v1863_v12 = vpop.f32.mrb[0].mxu1  ;;  %v656_v13 = vpop.f32.mrb[1].mxu0 }
 0x216   : > { %v697_v14 = vadd.f32 %v1863_v12, %v1716_v9  ;;  %v657_v15 = vadd.f32 %v1716_v9, %v656_v13  ;;  %v688_v16 = vpop.f32.mrb[1].mxu1  ;;  %v1856_v17 = vpop.f32.mrb[2].mxu0 }
 0x217   : > { %v689_v18 = vadd.f32 %v1716_v9, %v688_v16  ;;  %v668_v19 = vadd.f32 %v1856_v17, %v1716_v9  ;;  %v1864_v20 = vpop.f32.mrb[2].mxu1  ;;  %v659_v21 = vpop.f32.mrb[3].mxu0  ;;  %v721_v25 = vmax.f32 %v665_v11, 0.0 }
 0x218   : > { %v700_v22 = vadd.f32 %v1864_v20, %v1716_v9  ;;  %v660_v23 = vadd.f32 %v1716_v9, %v659_v21  ;;  %v691_v24 = vpop.f32.mrb[3].mxu1  ;;  %v729_v28 = vmax.f32 %v697_v14, 0.0  ;;  %v719_v29 = vmax.f32 %v657_v15, 0.0 }
 0x219   : > { %v722_v26 = vmax.f32 %v668_v19, 0.0  ;;  %v692_v27 = vadd.f32 %v1716_v9, %v691_v24  ;;  %v727_v32 = vmax.f32 %v689_v18, 0.0 }
 0x21a   : > { %v730_v30 = vmax.f32 %v700_v22, 0.0  ;;  %v720_v31 = vmax.f32 %v660_v23, 0.0 }
 0x21b   : > { %v736_v33 = vpack.c.bf16 %v722_v26, %v721_v25  ;;  %v728_v34 = vmax.f32 %v692_v27, 0.0 }
 0x21c   : > { %v740_v35 = vpack.c.bf16 %v730_v30, %v729_v28  ;;  %v735_v36 = vpack.c.bf16 %v720_v31, %v719_v29  ;;  %v1859_v37 = vpop.f32.mrb[4].mxu0 }
 0x21d   : > { %748 = vst [vmem:[%s3040_s10 + $0x8] sm:$0xff] %v736_v33  ;;  %v739_v38 = vpack.c.bf16 %v728_v34, %v727_v32  ;;  %v681_v39 = vadd.f32 %v1859_v37, %v1716_v9  ;;  %v1867_v40 = vpop.f32.mrb[4].mxu1  ;;  %v672_v41 = vpop.f32.mrb[5].mxu0 }
 0x21e   : > { %752 = vst [vmem:[%s3040_s10 + $0x28] sm:$0xff] %v740_v35  ;;  %747 = vst [vmem:[%s3040_s10] sm:$0xff] %v735_v36  ;;  %v713_v42 = vadd.f32 %v1867_v40, %v1716_v9  ;;  %v673_v43 = vadd.f32 %v1716_v9, %v672_v41  ;;  %v704_v44 = vpop.f32.mrb[5].mxu1  ;;  %v1860_v45 = vpop.f32.mrb[6].mxu0 }
 0x21f   : > { %751 = vst [vmem:[%s3040_s10 + $0x20] sm:$0xff] %v739_v38  ;;  %v705_v46 = vadd.f32 %v1716_v9, %v704_v44  ;;  %v684_v47 = vadd.f32 %v1860_v45, %v1716_v9  ;;  %v1868_v48 = vpop.f32.mrb[6].mxu1  ;;  %v675_v49 = vpop.f32.mrb[7].mxu0  ;;  %v725_v53 = vmax.f32 %v681_v39, 0.0 }
 0x220   : > { %v716_v50 = vadd.f32 %v1868_v48, %v1716_v9  ;;  %v676_v51 = vadd.f32 %v1716_v9, %v675_v49  ;;  %v707_v52 = vpop.f32.mrb[7].mxu1  ;;  %v733_v56 = vmax.f32 %v713_v42, 0.0  ;;  %v723_v57 = vmax.f32 %v673_v43, 0.0 }
 0x221   : > { %v726_v54 = vmax.f32 %v684_v47, 0.0  ;;  %v708_v55 = vadd.f32 %v1716_v9, %v707_v52  ;;  %v731_v60 = vmax.f32 %v705_v46, 0.0 }
 0x222   : > { %v734_v58 = vmax.f32 %v716_v50, 0.0  ;;  %v724_v59 = vmax.f32 %v676_v51, 0.0 }
 0x223   : > { %v738_v61 = vpack.c.bf16 %v726_v54, %v725_v53  ;;  %v732_v62 = vmax.f32 %v708_v55, 0.0 }
 0x224   : > { %v742_v63 = vpack.c.bf16 %v734_v58, %v733_v56  ;;  %v737_v0 = vpack.c.bf16 %v724_v59, %v723_v57 }
 0x225   : > { %750 = vst [vmem:[%s3040_s10 + $0x18] sm:$0xff] %v738_v61  ;;  %v741_v1 = vpack.c.bf16 %v732_v62, %v731_v60 }
 0x226   : > { %754 = vst [vmem:[%s3040_s10 + $0x38] sm:$0xff] %v742_v63  ;;  %749 = vst [vmem:[%s3040_s10 + $0x10] sm:$0xff] %v737_v0 }
 0x227   : > { %753 = vst [vmem:[%s3040_s10 + $0x30] sm:$0xff] %v741_v1 }
 0x228 PF: > { %s3286_s28 = sld [smem:[#allocation29_spill]] }
 0x22e   : > { %p1735_p10 = scmp.ne.s32.totalorder %s3286_s28, 0 }
 0x22f   : > { %v2172_v2 = vld [vmem:[%s3010_s6] sm:$0xff] (!%p1735_p10)   ;;  %s758_s3 = sshra.s32 (!%p1735_p10), %s3026_s8, 4  ;;  %v2173_v3 = vld [vmem:[%s3010_s6 + $0x8] sm:$0xff] (!%p1735_p10)   ;;  %v2174_v4 = vld [vmem:[%s3010_s6 + $0x10] sm:$0xff] (!%p1735_p10)  }
 0x230   : > { %757 = sbr.rel (%p1735_p10) target bundleno = 818 (0x332), region = 104  ;;  %1869 = vmatprep.subr.bf16.mxu0 (!%p1735_p10), %v2172_v2  ;;  %1955 = vmatprep.subr.bf16.mxu1 (!%p1735_p10), %v2172_v2  ;;  %s3054_s29 = sshll.u32 (!%p1735_p10), %s758_s3, 3  ;;  %v2175_v5 = vld [vmem:[%s3010_s6 + $0x18] sm:$0xff] (!%p1735_p10)   ;;  %v2176_v8 = vld [vmem:[%s3010_s6 + $0x20] sm:$0xff] (!%p1735_p10)   ;;  %v2177_v9 = vld [vmem:[%s3010_s6 + $0x28] sm:$0xff] (!%p1735_p10)  }
 0x231   : > { %1870 = vmatpush3.bf16.msra.mxu0 (!%p1735_p10), %v2172_v2  ;;  %1963 = vmatpush3.bf16.msra.mxu1 (!%p1735_p10), %v2172_v2  ;;  %s3059_s7 = scalar_lea.vmem (!%p1735_p10), [#allocation2], %s3054_s29  ;;  %v2178_v10 = vld [vmem:[%s3010_s6 + $0x30] sm:$0xff] (!%p1735_p10)   ;;  %v2179_v11 = vld [vmem:[%s3010_s6 + $0x38] sm:$0xff] (!%p1735_p10)   ;;  %s940_s19 = scalar_lea.vmem (!%p1735_p10), [#allocation3], %s3054_s29 }
 0x232   : > { %1871 = vmatprep.subr.bf16.mxu0 (!%p1735_p10), %v2173_v3  ;;  %1956 = vmatprep.subr.bf16.mxu1 (!%p1735_p10), %v2173_v3  ;;  %v762_v6 = vld [vmem:[%s3059_s7] sm:$0xff] (!%p1735_p10)  ;;  %v763_v12 = vld [vmem:[%s3059_s7 + $0x8] sm:$0xff] (!%p1735_p10)  ;;  %v764_v14 = vld [vmem:[%s3059_s7 + $0x10] sm:$0xff] (!%p1735_p10) }
 0x233   : > { %v766_v7 = vld [vmem:[%s3059_s7 + $0x20] sm:$0xff] (!%p1735_p10)  ;;  %1885 = vmatprep.mubr.bf16.mxu0 (!%p1735_p10), %v762_v6  ;;  %v767_v13 = vld [vmem:[%s3059_s7 + $0x28] sm:$0xff] (!%p1735_p10)  ;;  %v768_v15 = vld [vmem:[%s3059_s7 + $0x30] sm:$0xff] (!%p1735_p10) }
 0x234   : > { %1893 = vmatprep.mubr.bf16.mxu1 (!%p1735_p10), %v766_v7  ;;  %v765_v16 = vld [vmem:[%s3059_s7 + $0x18] sm:$0xff] (!%p1735_p10) }
 0x235   : > { %1872 = vmatpush3.bf16.msra.mxu0 (!%p1735_p10), %v2173_v3  ;;  %1964 = vmatpush3.bf16.msra.mxu1 (!%p1735_p10), %v2173_v3  ;;  %v769_v17 = vld [vmem:[%s3059_s7 + $0x38] sm:$0xff] (!%p1735_p10) }
 0x236   : > { %1873 = vmatprep.subr.bf16.mxu0 (!%p1735_p10), %v2174_v4  ;;  %1957 = vmatprep.subr.bf16.mxu1 (!%p1735_p10), %v2174_v4 }
 0x239   : > { %1874 = vmatpush3.bf16.msra.mxu0 %v2174_v4  ;;  %1965 = vmatpush3.bf16.msra.mxu1 %v2174_v4 }
 0x23a   : > { %1875 = vmatprep.subr.bf16.mxu0 %v2175_v5  ;;  %1958 = vmatprep.subr.bf16.mxu1 %v2175_v5 }
 0x23d   : > { %1876 = vmatpush3.bf16.msra.mxu0 %v2175_v5  ;;  %1966 = vmatpush3.bf16.msra.mxu1 %v2175_v5 }
 0x23e   : > { %1877 = vmatprep.subr.bf16.mxu0 %v2176_v8  ;;  %1959 = vmatprep.subr.bf16.mxu1 %v2176_v8 }
 0x241   : > { %1878 = vmatpush3.bf16.msra.mxu0 %v2176_v8  ;;  %1967 = vmatpush3.bf16.msra.mxu1 %v2176_v8 }
 0x242   : > { %1879 = vmatprep.subr.bf16.mxu0 %v2177_v9  ;;  %1960 = vmatprep.subr.bf16.mxu1 %v2177_v9 }
 0x245   : > { %1880 = vmatpush3.bf16.msra.mxu0 %v2177_v9  ;;  %1968 = vmatpush3.bf16.msra.mxu1 %v2177_v9 }
 0x246   : > { %1881 = vmatprep.subr.bf16.mxu0 %v2178_v10  ;;  %1961 = vmatprep.subr.bf16.mxu1 %v2178_v10 }
 0x249   : > { %1882 = vmatpush3.bf16.msra.mxu0 %v2178_v10  ;;  %1969 = vmatpush3.bf16.msra.mxu1 %v2178_v10 }
 0x24a   : > { %1883 = vmatprep.subr.bf16.mxu0 %v2179_v11  ;;  %1962 = vmatprep.subr.bf16.mxu1 %v2179_v11 }
 0x24d   : > { %1884 = vmatpush3.bf16.msra.mxu0 %v2179_v11  ;;  %1970 = vmatpush3.bf16.msra.mxu1 %v2179_v11 }
 0x250   : > { %1886 = vmatmul.mubr.bf16.vlgmr.msra.gmra.mrb[0].mxu0 %v763_v12  ;;  %1894 = vmatmul.mubr.bf16.vlgmr.msra.gmra.mrb[0].mxu1 %v767_v13 }
 0x251   : > { %1889 = vmatprep.mubr.bf16.mxu0 %v764_v14  ;;  %1897 = vmatprep.mubr.bf16.mxu1 %v768_v15 }
 0x258   : > { %1890 = vmatmul.mubr.bf16.gmra.mrb[4].mxu0 %v765_v16  ;;  %1898 = vmatmul.mubr.bf16.gmra.mrb[4].mxu1 %v769_v17 }
 0x323   : > { %v1887_v18 = vpop.f32.mrb[0].mxu0  ;;  %v1895_v19 = vpop.f32.mrb[0].mxu1 }
 0x324   : > { %v868_v20 = vpop.f32.mrb[1].mxu0  ;;  %v900_v21 = vpop.f32.mrb[1].mxu1 }
 0x325   : > { %v1888_v22 = vpop.f32.mrb[2].mxu0  ;;  %v1896_v23 = vpop.f32.mrb[2].mxu1 }
 0x326   : > { %v932_v24 = vpack.c.bf16 %v1888_v22, %v1887_v18  ;;  %v936_v25 = vpack.c.bf16 %v1896_v23, %v1895_v19  ;;  %v871_v26 = vpop.f32.mrb[3].mxu0  ;;  %v903_v27 = vpop.f32.mrb[3].mxu1 }
 0x327   : > { %v931_v28 = vpack.c.bf16 %v871_v26, %v868_v20  ;;  %v935_v29 = vpack.c.bf16 %v903_v27, %v900_v21 }
 0x328   : > { %942 = vst [vmem:[%s940_s19 + $0x8] sm:$0xff] %v932_v24  ;;  %946 = vst [vmem:[%s940_s19 + $0x28] sm:$0xff] %v936_v25 }
 0x329   : > { %941 = vst [vmem:[%s940_s19] sm:$0xff] %v931_v28  ;;  %945 = vst [vmem:[%s940_s19 + $0x20] sm:$0xff] %v935_v29 }
 0x32b   : > { %v1891_v30 = vpop.f32.mrb[4].mxu0  ;;  %v1899_v31 = vpop.f32.mrb[4].mxu1 }
 0x32c   : > { %v884_v32 = vpop.f32.mrb[5].mxu0  ;;  %v916_v33 = vpop.f32.mrb[5].mxu1 }
 0x32d   : > { %v1892_v34 = vpop.f32.mrb[6].mxu0  ;;  %v1900_v35 = vpop.f32.mrb[6].mxu1 }
 0x32e   : > { %v934_v36 = vpack.c.bf16 %v1892_v34, %v1891_v30  ;;  %v938_v37 = vpack.c.bf16 %v1900_v35, %v1899_v31  ;;  %v887_v38 = vpop.f32.mrb[7].mxu0  ;;  %v919_v39 = vpop.f32.mrb[7].mxu1 }
 0x32f   : > { %v933_v40 = vpack.c.bf16 %v887_v38, %v884_v32  ;;  %v937_v41 = vpack.c.bf16 %v919_v39, %v916_v33 }
 0x330   : > { %944 = vst [vmem:[%s940_s19 + $0x18] sm:$0xff] %v934_v36  ;;  %948 = vst [vmem:[%s940_s19 + $0x38] sm:$0xff] %v938_v37 }
 0x331   : > { %943 = vst [vmem:[%s940_s19 + $0x10] sm:$0xff] %v933_v40  ;;  %947 = vst [vmem:[%s940_s19 + $0x30] sm:$0xff] %v937_v41 }
 0x332 PF: > { %s3287_s6 = sld [smem:[#allocation28_spill]] }
 0x338   : > { %p1746_p5 = scmp.ne.s32.totalorder %s3287_s6, 0 }
 0x339   : > { %v2593_v42 = vmov (!%p1746_p5), 0.0  }
 0x33a   : > { %952 = sbr.rel (%p1746_p5) target bundleno = 834 (0x342), region = 108  ;;  %953 = vst [vmem:[#allocation4] sm:$0xff] (!%p1746_p5), %v2593_v42  ;;  %954 = vst [vmem:[#allocation4 + $0x8] sm:$0xff] (!%p1746_p5), %v2593_v42 }
 0x33b   : > { %955 = vst [vmem:[#allocation4 + $0x10] sm:$0xff] (!%p1746_p5), %v2593_v42  ;;  %956 = vst [vmem:[#allocation4 + $0x18] sm:$0xff] (!%p1746_p5), %v2593_v42 }
 0x33c   : > { %957 = vst [vmem:[#allocation4 + $0x20] sm:$0xff] (!%p1746_p5), %v2593_v42  ;;  %958 = vst [vmem:[#allocation4 + $0x28] sm:$0xff] (!%p1746_p5), %v2593_v42 }
 0x33d   : > { %959 = vst [vmem:[#allocation4 + $0x30] sm:$0xff] (!%p1746_p5), %v2593_v42  ;;  %960 = vst [vmem:[#allocation4 + $0x38] sm:$0xff] (!%p1746_p5), %v2593_v42 }
 0x33e   : > { %961 = vst [vmem:[#allocation4 + $0x40] sm:$0xff] (!%p1746_p5), %v2593_v42  ;;  %962 = vst [vmem:[#allocation4 + $0x48] sm:$0xff] (!%p1746_p5), %v2593_v42 }
 0x33f   : > { %963 = vst [vmem:[#allocation4 + $0x50] sm:$0xff] (!%p1746_p5), %v2593_v42  ;;  %964 = vst [vmem:[#allocation4 + $0x58] sm:$0xff] (!%p1746_p5), %v2593_v42 }
 0x340   : > { %965 = vst [vmem:[#allocation4 + $0x60] sm:$0xff] (!%p1746_p5), %v2593_v42  ;;  %966 = vst [vmem:[#allocation4 + $0x68] sm:$0xff] (!%p1746_p5), %v2593_v42 }
 0x341   : > { %967 = vst [vmem:[#allocation4 + $0x70] sm:$0xff] %v2593_v42  ;;  %968 = vst [vmem:[#allocation4 + $0x78] sm:$0xff] %v2593_v42 }
 0x342 PF: > { %s3288_s20 = sld [smem:[#allocation28_spill]]  ;;  %s1007_s30 = sshra.s32 %s3026_s8, 4  ;;  %v991_v61 = vld [vmem:[#allocation4] sm:$0xff]  ;;  %v992_v7 = vld [vmem:[#allocation4 + $0x8] sm:$0xff] }
 0x343   : > { %s969_s13 = sshra.s32 %s3023_s5, 3  ;;  %s1749_s14 = sshll.u32 %s1007_s30, 3  ;;  %v993_v59 = vld [vmem:[#allocation4 + $0x10] sm:$0xff]  ;;  %v994_v1 = vld [vmem:[#allocation4 + $0x18] sm:$0xff] }
 0x344   : > { %s3078_s27 = scalar_lea.vmem [#allocation3], %s1749_s14  ;;  %v995_v21 = vld [vmem:[#allocation4 + $0x20] sm:$0xff]  ;;  %v996_v31 = vld [vmem:[#allocation4 + $0x28] sm:$0xff] }
 0x345   : > { %v1011_v43 = vld [vmem:[%s3078_s27] sm:$0xff]  ;;  %v1012_v44 = vld [vmem:[%s3078_s27 + $0x8] sm:$0xff]  ;;  %v1013_v45 = vld [vmem:[%s3078_s27 + $0x10] sm:$0xff] }
 0x346   : > { %1901 = vmatprep.subr.bf16.mxu0 %v1011_v43  ;;  %1971 = vmatprep.subr.bf16.mxu1 %v1011_v43  ;;  %v1014_v48 = vld [vmem:[%s3078_s27 + $0x18] sm:$0xff]  ;;  %v1015_v49 = vld [vmem:[%s3078_s27 + $0x20] sm:$0xff]  ;;  %v1016_v50 = vld [vmem:[%s3078_s27 + $0x28] sm:$0xff] }
 0x347   : > { %1902 = vmatpush3.bf16.msra.mxu0 %v1011_v43  ;;  %1979 = vmatpush3.bf16.msra.mxu1 %v1011_v43  ;;  %v1017_v51 = vld [vmem:[%s3078_s27 + $0x30] sm:$0xff]  ;;  %v1018_v52 = vld [vmem:[%s3078_s27 + $0x38] sm:$0xff]  ;;  %v999_v62 = vld [vmem:[#allocation4 + $0x40] sm:$0xff] }
 0x348   : > { %s1747_s1 = sshll.u32 %s3288_s20, 5  ;;  %1903 = vmatprep.subr.bf16.mxu0 %v1012_v44  ;;  %1972 = vmatprep.subr.bf16.mxu1 %v1012_v44  ;;  %p1196_p6 = scmp.eq.s32.totalorder %s3288_s20, 1  ;;  %v1001_v60 = vld [vmem:[#allocation4 + $0x50] sm:$0xff]  ;;  %v1002_v2 = vld [vmem:[#allocation4 + $0x58] sm:$0xff]  ;;  %v1000_v8 = vld [vmem:[#allocation4 + $0x48] sm:$0xff] }
 0x349   : > { %s972_s11 = sadd.s32 %s1747_s1, %s969_s13  ;;  %v997_v19 = vld [vmem:[#allocation4 + $0x30] sm:$0xff]  ;;  %v1003_v22 = vld [vmem:[#allocation4 + $0x60] sm:$0xff]  ;;  %v998_v25 = vld [vmem:[#allocation4 + $0x38] sm:$0xff]  ;;  %p1758_p12 = scmp.ne.s32.totalorder %s3288_s20, 1 }
 0x34a   : > { %s1748_s18 = sshll.u32 %s972_s11, 2  ;;  %v1005_v20 = vld [vmem:[#allocation4 + $0x70] sm:$0xff]  ;;  %v1006_v26 = vld [vmem:[#allocation4 + $0x78] sm:$0xff]  ;;  %v1004_v32 = vld [vmem:[#allocation4 + $0x68] sm:$0xff] }
 0x34b   : > { %s3083_s10 = scalar_lea.vmem [#allocation9], %s1748_s18  ;;  %1904 = vmatpush3.bf16.msra.mxu0 %v1012_v44  ;;  %1980 = vmatpush3.bf16.msra.mxu1 %v1012_v44 }
 0x34c   : > { %v2180_v46 = vld [vmem:[%s3083_s10] sm:$0xff]   ;;  %1905 = vmatprep.subr.bf16.mxu0 %v1013_v45  ;;  %1973 = vmatprep.subr.bf16.mxu1 %v1013_v45  ;;  %v2182_v53 = vld [vmem:[%s3083_s10 + $0x8] sm:$0xff]   ;;  %v2184_v55 = vld [vmem:[%s3083_s10 + $0x10] sm:$0xff]  }
 0x34d   : > { %v2181_v47 = vld [vmem:[%s3083_s10 + $0x20] sm:$0xff]   ;;  %1917 = vmatprep.mubr.bf16.mxu0 %v2180_v46  ;;  %v2183_v54 = vld [vmem:[%s3083_s10 + $0x28] sm:$0xff]   ;;  %v2185_v56 = vld [vmem:[%s3083_s10 + $0x30] sm:$0xff]  }
 0x34e   : > { %1925 = vmatprep.mubr.bf16.mxu1 %v2181_v47  ;;  %v2186_v57 = vld [vmem:[%s3083_s10 + $0x18] sm:$0xff]  }
 0x34f   : > { %1906 = vmatpush3.bf16.msra.mxu0 %v1013_v45  ;;  %1981 = vmatpush3.bf16.msra.mxu1 %v1013_v45  ;;  %v2187_v58 = vld [vmem:[%s3083_s10 + $0x38] sm:$0xff]  }
 0x350   : > { %1907 = vmatprep.subr.bf16.mxu0 %v1014_v48  ;;  %1974 = vmatprep.subr.bf16.mxu1 %v1014_v48 }
 0x353   : > { %1908 = vmatpush3.bf16.msra.mxu0 %v1014_v48  ;;  %1982 = vmatpush3.bf16.msra.mxu1 %v1014_v48 }
 0x354   : > { %1909 = vmatprep.subr.bf16.mxu0 %v1015_v49  ;;  %1975 = vmatprep.subr.bf16.mxu1 %v1015_v49 }
 0x357   : > { %1910 = vmatpush3.bf16.msra.mxu0 %v1015_v49  ;;  %1983 = vmatpush3.bf16.msra.mxu1 %v1015_v49 }
 0x358   : > { %1911 = vmatprep.subr.bf16.mxu0 %v1016_v50  ;;  %1976 = vmatprep.subr.bf16.mxu1 %v1016_v50 }
 0x35b   : > { %1912 = vmatpush3.bf16.msra.mxu0 %v1016_v50  ;;  %1984 = vmatpush3.bf16.msra.mxu1 %v1016_v50 }
 0x35c   : > { %1913 = vmatprep.subr.bf16.mxu0 %v1017_v51  ;;  %1977 = vmatprep.subr.bf16.mxu1 %v1017_v51 }
 0x35f   : > { %1914 = vmatpush3.bf16.msra.mxu0 %v1017_v51  ;;  %1985 = vmatpush3.bf16.msra.mxu1 %v1017_v51 }
 0x360   : > { %1915 = vmatprep.subr.bf16.mxu0 %v1018_v52  ;;  %1978 = vmatprep.subr.bf16.mxu1 %v1018_v52 }
 0x363   : > { %1916 = vmatpush3.bf16.msra.mxu0 %v1018_v52  ;;  %1986 = vmatpush3.bf16.msra.mxu1 %v1018_v52 }
 0x366   : > { %1918 = vmatmul.mubr.bf16.vlgmr.msra.gmra.mrb[0].mxu0 %v2182_v53  ;;  %1926 = vmatmul.mubr.bf16.vlgmr.msra.gmra.mrb[0].mxu1 %v2183_v54 }
 0x367   : > { %1921 = vmatprep.mubr.bf16.mxu0 %v2184_v55  ;;  %1929 = vmatprep.mubr.bf16.mxu1 %v2185_v56  ;;  %v1759_v56 = vld [vmem:[%s3016_s26] ss:$0 sm:$0xff] (!%p1758_p12)  ;;  %s3289_s26 = sld [smem:[#allocation30_spill]] (!%p1758_p12) }
 0x36d   : > { %p1760_p0 = scmp.ge.s32.totalorder (!%p1758_p12), %s3289_s26, 4 }
 0x36e   : > { %1922 = vmatmul.mubr.bf16.gmra.mrb[4].mxu0 %v2186_v57  ;;  %1930 = vmatmul.mubr.bf16.gmra.mrb[4].mxu1 %v2187_v58 }
 0x439   : > { %v1919_v63 = vpop.f32.mrb[0].mxu0  ;;  %v1927_v0 = vpop.f32.mrb[0].mxu1 }
 0x43a   : > { %v1166_v3 = vadd.f32 %v1919_v63, %v993_v59  ;;  %v1174_v4 = vadd.f32 %v1927_v0, %v1001_v60  ;;  %v1101_v5 = vpop.f32.mrb[1].mxu0  ;;  %v1133_v6 = vpop.f32.mrb[1].mxu1 }
 0x43b   : > { %v1164_v9 = vadd.f32 %v1101_v5, %v991_v61  ;;  %v1172_v10 = vadd.f32 %v1133_v6, %v999_v62  ;;  %v1920_v11 = vpop.f32.mrb[2].mxu0  ;;  %v1928_v12 = vpop.f32.mrb[2].mxu1 }
 0x43c   : > { %1182 = vst [vmem:[#allocation4 + $0x10] sm:$0xff] %v1166_v3  ;;  %1190 = vst [vmem:[#allocation4 + $0x50] sm:$0xff] %v1174_v4  ;;  %v1167_v13 = vadd.f32 %v1920_v11, %v994_v1  ;;  %v1175_v14 = vadd.f32 %v1928_v12, %v1002_v2  ;;  %v1104_v15 = vpop.f32.mrb[3].mxu0  ;;  %v1136_v16 = vpop.f32.mrb[3].mxu1 }
 0x43d   : > { %1180 = vst [vmem:[#allocation4] sm:$0xff] %v1164_v9  ;;  %1188 = vst [vmem:[#allocation4 + $0x40] sm:$0xff] %v1172_v10  ;;  %v1165_v17 = vadd.f32 %v1104_v15, %v992_v7  ;;  %v1173_v18 = vadd.f32 %v1136_v16, %v1000_v8 }
 0x43e   : > { %1183 = vst [vmem:[#allocation4 + $0x18] sm:$0xff] %v1167_v13  ;;  %1191 = vst [vmem:[#allocation4 + $0x58] sm:$0xff] %v1175_v14 }
 0x43f   : > { %1181 = vst [vmem:[#allocation4 + $0x8] sm:$0xff] %v1165_v17  ;;  %1189 = vst [vmem:[#allocation4 + $0x48] sm:$0xff] %v1173_v18 }
 0x441   : > { %v1923_v23 = vpop.f32.mrb[4].mxu0  ;;  %v1931_v24 = vpop.f32.mrb[4].mxu1  ;;  %1199 = sbr.rel (%p1758_p12) target bundleno = 1126 (0x466), region = 112 }
 0x442   : > { %v1170_v27 = vadd.f32 %v1923_v23, %v997_v19  ;;  %v1178_v28 = vadd.f32 %v1931_v24, %v1005_v20  ;;  %v1117_v29 = vpop.f32.mrb[5].mxu0  ;;  %v1149_v30 = vpop.f32.mrb[5].mxu1 }
 0x443   : > { %v1168_v33 = vadd.f32 %v1117_v29, %v995_v21  ;;  %v1176_v34 = vadd.f32 %v1149_v30, %v1003_v22  ;;  %v1924_v35 = vpop.f32.mrb[6].mxu0  ;;  %v1932_v36 = vpop.f32.mrb[6].mxu1  ;;  %v1202_v45 = vld [vmem:[#allocation4 + $0x10] sm:$0xff] (!%p1758_p12) }
 0x444   : > { %1186 = vst [vmem:[#allocation4 + $0x30] sm:$0xff] %v1170_v27  ;;  %1194 = vst [vmem:[#allocation4 + $0x70] sm:$0xff] %v1178_v28  ;;  %v1171_v37 = vadd.f32 %v1924_v35, %v998_v25  ;;  %v1179_v38 = vadd.f32 %v1932_v36, %v1006_v26  ;;  %v1120_v39 = vpop.f32.mrb[7].mxu0  ;;  %v1152_v40 = vpop.f32.mrb[7].mxu1  ;;  %v1200_v43 = vld [vmem:[#allocation4] sm:$0xff] (!%p1758_p12)  ;;  %v1210_v53 = vld [vmem:[#allocation4 + $0x50] sm:$0xff] (!%p1758_p12)  ;;  %v3105_v62 = vadd.f32 (!%p1758_p12), %v1759_v56, %v1202_v45 }
 0x445   : > { %1184 = vst [vmem:[#allocation4 + $0x20] sm:$0xff] %v1168_v33  ;;  %1192 = vst [vmem:[#allocation4 + $0x60] sm:$0xff] %v1176_v34  ;;  %v1169_v41 = vadd.f32 %v1120_v39, %v996_v31  ;;  %v1177_v42 = vadd.f32 %v1152_v40, %v1004_v32  ;;  %v1203_v46 = vld [vmem:[#allocation4 + $0x18] sm:$0xff] (!%p1758_p12)  ;;  %v1208_v51 = vld [vmem:[#allocation4 + $0x40] sm:$0xff] (!%p1758_p12)  ;;  %v3101_v60 = vadd.f32 (!%p1758_p12), %v1759_v56, %v1200_v43 }
 0x446   : > { %1187 = vst [vmem:[#allocation4 + $0x38] sm:$0xff] %v1171_v37  ;;  %1195 = vst [vmem:[#allocation4 + $0x78] sm:$0xff] %v1179_v38  ;;  %v1201_v44 = vld [vmem:[#allocation4 + $0x8] sm:$0xff] (!%p1758_p12)  ;;  %v1211_v54 = vld [vmem:[#allocation4 + $0x58] sm:$0xff] (!%p1758_p12)  ;;  %v3107_v63 = vadd.f32 (!%p1758_p12), %v1759_v56, %v1203_v46  ;;  %v3117_v4 = vadd.f32 (!%p1758_p12), %v1759_v56, %v1208_v51  ;;  %v1233_v6 = vadd.f32 (!%p1758_p12), %v1759_v56, %v1210_v53 }
 0x447   : > { %1185 = vst [vmem:[#allocation4 + $0x28] sm:$0xff] %v1169_v41  ;;  %1193 = vst [vmem:[#allocation4 + $0x68] sm:$0xff] %v1177_v42  ;;  %v1209_v52 = vld [vmem:[#allocation4 + $0x48] sm:$0xff] (!%p1758_p12)  ;;  %v3103_v61 = vadd.f32 (!%p1758_p12), %v1759_v56, %v1201_v44  ;;  %v1234_v7 = vadd.f32 (!%p1758_p12), %v1759_v56, %v1211_v54 }
 0x448   : > { %v1232_v5 = vadd.f32 %v1759_v56, %v1209_v52  ;;  %v1243_v12 = vmax.f32 (!%p1760_p0), %v3101_v60, 0.0  ;;  %s1267_s8 = sshra.s32 (!%p1760_p0), %s3023_s5, 4  ;;  %v1245_v14 = vmax.f32 (!%p1760_p0), %v3105_v62, 0.0  ;;  %v1246_v15 = vmax.f32 (!%p1760_p0), %v3107_v63, 0.0 }
 0x449   : > { %v1244_v13 = vmax.f32 (!%p1760_p0), %v3103_v61, 0.0  ;;  %s1761_s28 = sshll.u32 (!%p1760_p0), %s1267_s8, 3  ;;  %v1251_v22 = vmax.f32 (!%p1760_p0), %v3117_v4, 0.0  ;;  %v1253_v26 = vmax.f32 (!%p1760_p0), %v1233_v6, 0.0  ;;  %v1254_v27 = vmax.f32 (!%p1760_p0), %v1234_v7, 0.0 }
 0x44a   : > { %1242 = sbr.rel (%p1760_p0) target bundleno = 1111 (0x457), region = 116  ;;  %v1260_v21 = vpack.c.bf16 (!%p1760_p0), %v1246_v15, %v1245_v14  ;;  %v1252_v23 = vmax.f32 (!%p1760_p0), %v1232_v5, 0.0  ;;  %s1270_s3 = scalar_lea.vmem (!%p1760_p0), [#allocation2], %s1761_s28 }
 0x44b   : > { %v1206_v49 = vld [vmem:[#allocation4 + $0x30] sm:$0xff]  ;;  %v1259_v20 = vpack.c.bf16 (!%p1760_p0), %v1244_v13, %v1243_v12  ;;  %v1264_v32 = vpack.c.bf16 (!%p1760_p0), %v1254_v27, %v1253_v26 }
 0x44c   : > { %v1204_v47 = vld [vmem:[#allocation4 + $0x20] sm:$0xff]  ;;  %v1214_v58 = vld [vmem:[#allocation4 + $0x70] sm:$0xff]  ;;  %v3113_v2 = vadd.f32 %v1759_v56, %v1206_v49  ;;  %1272 = vst [vmem:[%s1270_s3 + $0x8] sm:$0xff] (!%p1760_p0), %v1260_v21  ;;  %v1263_v28 = vpack.c.bf16 (!%p1760_p0), %v1252_v23, %v1251_v22 }
 0x44d   : > { %v1207_v50 = vld [vmem:[#allocation4 + $0x38] sm:$0xff]  ;;  %v1212_v55 = vld [vmem:[#allocation4 + $0x60] sm:$0xff]  ;;  %v3109_v0 = vadd.f32 %v1759_v56, %v1204_v47  ;;  %v1237_v10 = vadd.f32 %v1759_v56, %v1214_v58  ;;  %1271 = vst [vmem:[%s1270_s3] sm:$0xff] (!%p1760_p0), %v1259_v20  ;;  %1276 = vst [vmem:[%s1270_s3 + $0x28] sm:$0xff] (!%p1760_p0), %v1264_v32 }
 0x44e   : > { %v1205_v48 = vld [vmem:[#allocation4 + $0x28] sm:$0xff]  ;;  %v1215_v59 = vld [vmem:[#allocation4 + $0x78] sm:$0xff]  ;;  %v3115_v3 = vadd.f32 %v1759_v56, %v1207_v50  ;;  %v1235_v8 = vadd.f32 %v1759_v56, %v1212_v55  ;;  %v1249_v18 = vmax.f32 (!%p1760_p0), %v3113_v2, 0.0  ;;  %1275 = vst [vmem:[%s1270_s3 + $0x20] sm:$0xff] (!%p1760_p0), %v1263_v28 }
 0x44f   : > { %v1213_v57 = vld [vmem:[#allocation4 + $0x68] sm:$0xff]  ;;  %v3111_v1 = vadd.f32 %v1759_v56, %v1205_v48  ;;  %v1238_v11 = vadd.f32 %v1759_v56, %v1215_v59  ;;  %v1247_v16 = vmax.f32 (!%p1760_p0), %v3109_v0, 0.0  ;;  %v1257_v31 = vmax.f32 (!%p1760_p0), %v1237_v10, 0.0 }
 0x450   : > { %v1236_v9 = vadd.f32 %v1759_v56, %v1213_v57  ;;  %v1250_v19 = vmax.f32 (!%p1760_p0), %v3115_v3, 0.0  ;;  %v1255_v29 = vmax.f32 (!%p1760_p0), %v1235_v8, 0.0 }
 0x451   : > { %v1248_v17 = vmax.f32 %v3111_v1, 0.0  ;;  %v1258_v33 = vmax.f32 %v1238_v11, 0.0 }
 0x452   : > { %v1262_v25 = vpack.c.bf16 %v1250_v19, %v1249_v18  ;;  %v1256_v30 = vmax.f32 %v1236_v9, 0.0 }
 0x453   : > { %v1261_v24 = vpack.c.bf16 %v1248_v17, %v1247_v16  ;;  %v1266_v35 = vpack.c.bf16 %v1258_v33, %v1257_v31 }
 0x454   : > { %1274 = vst [vmem:[%s1270_s3 + $0x18] sm:$0xff] %v1262_v25  ;;  %v1265_v34 = vpack.c.bf16 %v1256_v30, %v1255_v29 }
 0x455   : > { %1273 = vst [vmem:[%s1270_s3 + $0x10] sm:$0xff] %v1261_v24  ;;  %1278 = vst [vmem:[%s1270_s3 + $0x38] sm:$0xff] %v1266_v35 }
 0x456   : > { %1277 = vst [vmem:[%s1270_s3 + $0x30] sm:$0xff] %v1265_v34 }
 0x457 PF: > { %s3290_s29 = sld [smem:[#allocation30_spill]] }
 0x45d   : > { %p1762_p4 = scmp.ne.s32.totalorder %s3290_s29, 4 }
 0x45e   : > { %v1283_v36 = vpack.c.bf16 (!%p1762_p4), %v3103_v61, %v3101_v60  ;;  %s1291_s7 = sshra.s32 (!%p1762_p4), %s3023_s5, 4  ;;  %v1284_v37 = vpack.c.bf16 (!%p1762_p4), %v3107_v63, %v3105_v62  ;;  %v1285_v38 = vpack.c.bf16 (!%p1762_p4), %v3111_v1, %v3109_v0  ;;  %v1286_v39 = vpack.c.bf16 (!%p1762_p4), %v3115_v3, %v3113_v2 }
 0x45f   : > { %1282 = sbr.rel (%p1762_p4) target bundleno = 1126 (0x466), region = 120  ;;  %s1763_s19 = sshll.u32 (!%p1762_p4), %s1291_s7, 3  ;;  %v1287_v40 = vpack.c.bf16 (!%p1762_p4), %v1232_v5, %v3117_v4  ;;  %v1288_v41 = vpack.c.bf16 (!%p1762_p4), %v1234_v7, %v1233_v6  ;;  %v1289_v42 = vpack.c.bf16 (!%p1762_p4), %v1236_v9, %v1235_v8  ;;  %v1290_v43 = vpack.c.bf16 (!%p1762_p4), %v1238_v11, %v1237_v10 }
 0x460   : > { %s1294_s6 = scalar_lea.vmem (!%p1762_p4), [#allocation2], %s1763_s19 }
 0x461   : > { %1295 = vst [vmem:[%s1294_s6] sm:$0xff] (!%p1762_p4), %v1283_v36  ;;  %1296 = vst [vmem:[%s1294_s6 + $0x8] sm:$0xff] (!%p1762_p4), %v1284_v37 }
 0x462   : > { %1297 = vst [vmem:[%s1294_s6 + $0x10] sm:$0xff] (!%p1762_p4), %v1285_v38  ;;  %1298 = vst [vmem:[%s1294_s6 + $0x18] sm:$0xff] (!%p1762_p4), %v1286_v39 }
 0x463   : > { %1299 = vst [vmem:[%s1294_s6 + $0x20] sm:$0xff] (!%p1762_p4), %v1287_v40  ;;  %1300 = vst [vmem:[%s1294_s6 + $0x28] sm:$0xff] (!%p1762_p4), %v1288_v41 }
 0x464   : > { %1301 = vst [vmem:[%s1294_s6 + $0x30] sm:$0xff] (!%p1762_p4), %v1289_v42  ;;  %1302 = vst [vmem:[%s1294_s6 + $0x38] sm:$0xff] (!%p1762_p4), %v1290_v43 }
 0x466 PF: > { %s3291_s5 = sld [smem:[#allocation30_spill]]  ;;  %s3292_s20 = sld [smem:[#allocation29_spill]] }
 0x46c   : > { %p1303_p8 = scmp.eq.s32.totalorder %s3291_s5, 4  ;;  %p1304_p13 = scmp.eq.s32.totalorder %s3292_s20, 1 }
 0x46e   : > { %p1305_p9 = pnand %p1304_p13, %p1303_p8 }
 0x470   : > { %p1306_p11 = pneg %p1305_p9 }
 0x472   : > { %p1307_p7 = pnand %p1306_p11, %p1196_p6 }
 0x473   : > { %v1320_v44 = vld [vmem:[#allocation2 + $0x40] sm:$0xff] (!%p1307_p7)  ;;  %v1321_v46 = vld [vmem:[#allocation2 + $0x48] sm:$0xff] (!%p1307_p7)  ;;  %v1340_v47 = vlaneseq (!%p1307_p7)  ;;  %v2594_v48 = vmov (!%p1307_p7), 1966171168   ;;  %v2595_v50 = vmov (!%p1307_p7), 0.0   ;;  %v1322_v54 = vld [vmem:[#allocation2 + $0x50] sm:$0xff] (!%p1307_p7) }
 0x474   : > { %1310 = sbr.rel (%p1307_p7) target bundleno = 1607 (0x647), region = 124  ;;  %v1312_v45 = vld [vmem:[#allocation2] sm:$0xff] (!%p1307_p7)  ;;  %1820 = vmatprep.subr.bf16.mxu0 (!%p1307_p7), %v1320_v44  ;;  %v1338_v49 = vunpack.c.l.s4 (!%p1307_p7), %v2594_v48  ;;  %1933 = vmatprep.subr.bf16.mxu1 (!%p1307_p7), %v2595_v50  ;;  %v1313_v52 = vld [vmem:[#allocation2 + $0x8] sm:$0xff] (!%p1307_p7)  ;;  %v1314_v55 = vld [vmem:[#allocation2 + $0x10] sm:$0xff] (!%p1307_p7)  ;;  %vm2596_vm1 = vmmov (!%p1307_p7), 0   ;;  %s1505_s13 = sld [smem:[#allocation5]] (!%p1307_p7) }
 0x475   : > { %1821 = vmatpush3.bf16.msra.mxu0 (!%p1307_p7), %v1312_v45  ;;  %v1341_v51 = vshrl.u32 (!%p1307_p7), %v1340_v47, 7  ;;  %v1764_v56 = vld.sshfl [vmem:[#allocation11] sm:$0x11 pattern:$0x75316420] (!%p1307_p7)  ;;  %v2188_v58 = vld [vmem:[#allocation18] sm:$0xff] (!%p1307_p7)   ;;  %1949 = vmatprep.mubr.msk.bf16.mxu1 (!%p1307_p7), %vm2596_vm1, %v2595_v50 }
 0x476   : > { %1822 = vmatprep.subr.bf16.mxu0 (!%p1307_p7), %v1321_v46  ;;  %v1339_v53 = vunpack.c.0.s8 (!%p1307_p7), %v1338_v49  ;;  %v1336_v59 = vcombine.high (!%p1307_p7), %v1764_v56, %v1764_v56  ;;  %1934 = vmatpush3.bf16.msra.mxu1 (!%p1307_p7), %v2188_v58  ;;  %v2189_v60 = vld [vmem:[#allocation18 + $0x8] sm:$0xff] (!%p1307_p7)   ;;  %v2190_v0 = vld [vmem:[#allocation18 + $0x10] sm:$0xff] (!%p1307_p7)   ;;  %v2191_v3 = vld [vmem:[#allocation18 + $0x18] sm:$0xff] (!%p1307_p7)  }
 0x477   : > { %v1323_v61 = vld [vmem:[#allocation2 + $0x58] sm:$0xff] (!%p1307_p7)  ;;  %1935 = vmatprep.subr.bf16.mxu1 (!%p1307_p7), %v2595_v50  ;;  %v1324_v1 = vld [vmem:[#allocation2 + $0x60] sm:$0xff] (!%p1307_p7)  ;;  %v1325_v4 = vld [vmem:[#allocation2 + $0x68] sm:$0xff] (!%p1307_p7) }
 0x478   : > { %v1342_v57 = vsub.s32 (!%p1307_p7), %v1339_v53, %v1341_v51  ;;  %v1315_v63 = vld [vmem:[#allocation2 + $0x18] sm:$0xff] (!%p1307_p7)  ;;  %v1316_v2 = vld [vmem:[#allocation2 + $0x20] sm:$0xff] (!%p1307_p7)  ;;  %v1317_v5 = vld [vmem:[#allocation2 + $0x28] sm:$0xff] (!%p1307_p7) }
 0x479   : > { %1823 = vmatpush3.bf16.msra.mxu0 (!%p1307_p7), %v1313_v52  ;;  %v2192_v6 = vld [vmem:[#allocation18 + $0x20] sm:$0xff] (!%p1307_p7)   ;;  %v2193_v9 = vld [vmem:[#allocation18 + $0x28] sm:$0xff] (!%p1307_p7)   ;;  %v2194_v12 = vld [vmem:[#allocation18 + $0x30] sm:$0xff] (!%p1307_p7)  }
 0x47a   : > { %1824 = vmatprep.subr.bf16.mxu0 (!%p1307_p7), %v1322_v54  ;;  %v1350_v62 = vrot.slane (!%p1307_p7), %v1336_v59, %v1342_v57  ;;  %1936 = vmatpush3.bf16.msra.mxu1 (!%p1307_p7), %v2189_v60  ;;  %v1326_v7 = vld [vmem:[#allocation2 + $0x70] sm:$0xff] (!%p1307_p7)  ;;  %v1327_v10 = vld [vmem:[#allocation2 + $0x78] sm:$0xff] (!%p1307_p7)  ;;  %v1343_v13 = vrot.slane (!%p1307_p7), %v1764_v56, %v1342_v57  ;;  %v2195_v14 = vld [vmem:[#allocation18 + $0x38] sm:$0xff] (!%p1307_p7)   ;;  %v1507_v23 = vstv (!%p1307_p7), %s1505_s13 }
 0x47b   : > { %1937 = vmatprep.subr.bf16.mxu1 %v2595_v50  ;;  %v1318_v8 = vld [vmem:[#allocation2 + $0x30] sm:$0xff]  ;;  %v1319_v11 = vld [vmem:[#allocation2 + $0x38] sm:$0xff]  ;;  %v1765_v21 = vld [vmem:[#allocation20] ss:$0 sm:$0xff] }
 0x47c   : > { %1385 = vmatprep.mubr.bf16.mxu0 %v1350_v62 }
 0x47d   : > { %1825 = vmatpush3.bf16.msra.mxu0 %v1314_v55 }
 0x47e   : > { %1826 = vmatprep.subr.bf16.mxu0 %v1323_v61  ;;  %1938 = vmatpush3.bf16.msra.mxu1 %v2190_v0 }
 0x47f   : > { %1939 = vmatprep.subr.bf16.mxu1 %v2595_v50 }
 0x481   : > { %1827 = vmatpush3.bf16.msra.mxu0 %v1315_v63 }
 0x482   : > { %1828 = vmatprep.subr.bf16.mxu0 %v1324_v1  ;;  %1940 = vmatpush3.bf16.msra.mxu1 %v2191_v3 }
 0x483   : > { %1941 = vmatprep.subr.bf16.mxu1 %v2595_v50 }
 0x485   : > { %1829 = vmatpush3.bf16.msra.mxu0 %v1316_v2 }
 0x486   : > { %1830 = vmatprep.subr.bf16.mxu0 %v1325_v4  ;;  %1942 = vmatpush3.bf16.msra.mxu1 %v2192_v6 }
 0x487   : > { %1943 = vmatprep.subr.bf16.mxu1 %v2595_v50 }
 0x489   : > { %1831 = vmatpush3.bf16.msra.mxu0 %v1317_v5 }
 0x48a   : > { %1832 = vmatprep.subr.bf16.mxu0 %v1326_v7  ;;  %1944 = vmatpush3.bf16.msra.mxu1 %v2193_v9 }
 0x48b   : > { %1945 = vmatprep.subr.bf16.mxu1 %v2595_v50 }
 0x48d   : > { %1833 = vmatpush3.bf16.msra.mxu0 %v1318_v8 }
 0x48e   : > { %1834 = vmatprep.subr.bf16.mxu0 %v1327_v10  ;;  %1946 = vmatpush3.bf16.msra.mxu1 %v2194_v12 }
 0x48f   : > { %1947 = vmatprep.subr.bf16.mxu1 %v2595_v50 }
 0x491   : > { %1835 = vmatpush3.bf16.msra.mxu0 %v1319_v11 }
 0x492   : > { %1948 = vmatpush3.bf16.msra.mxu1 %v2195_v14 }
 0x494   : > { %1386 = vmatmul.mubr.bf16.vlgmr.msra.gmra.mrb[0].mxu0 %v1343_v13 }
 0x567   : > { %v1836_v15 = vpop.f32.mrb[0].mxu0 }
 0x568   : > { %v1837_v16 = vpop.f32.mrb[1].mxu0 }
 0x569   : > { %v1838_v17 = vadd.f32 %v1837_v16, %v1836_v15  ;;  %v1839_v18 = vpop.f32.mrb[2].mxu0 }
 0x56a   : > { %v1840_v19 = vpop.f32.mrb[3].mxu0 }
 0x56b   : > { %v1393_v20 = vpack.c.bf16 %v1838_v17, %v1838_v17 }
 0x56d   : > { %1950 = vmatmul.mubr.bf16.vlgmr.msra.gmra.mrb[0].mxu1 %v1393_v20 }
 0x640   : > { %v1499_v22 = vpop.f32.mrb[0].mxu1 }
 0x641   : > { %v1500_v24 = vadd.f32 %v1765_v21, %v1499_v22  ;;  %v1951_v25 = vpop.f32.mrb[1].mxu1 }
 0x642   : > { %v1502_v26 = vpop.f32.mrb[2].mxu1 }
 0x643   : > { %vm1506_vm2 = vcmp.gt.f32.partialorder %v1500_v24, 0.0  ;;  %v1508_v27 = vmul.f32 %v1507_v23, %v1500_v24  ;;  %v1952_v28 = vpop.f32.mrb[3].mxu1 }
 0x645   : > { %v1509_v29 = vsel %vm1506_vm2, %v1500_v24, %v1508_v27 }
 0x646   : > { %1510 = vst [vmem:[#allocation21] sm:$0x3] %v1509_v29 }
 0x647 PF: > { %p2067_p3 = scmp.eq.s32.totalorder %s2707_s24, 19  ;;  %s2597_s14 = smov [#allocation21]  }
 0x648   : > { %s1518_s1 = sshll.u32 %s2597_s14, 4  ;;  %s1519_s1 = int_to_ptr.vmem [resolvable:$true] %s1518_s1 }
 0x649   : > { %s2452_s11 = scalar_lea.vmem %s1519_s1, 32  ;;  %p2459_p5 = scmp.lt.s32.totalorder %s1519_s1, %s1519_s1 }
 0x64a   : > { %p2453_p2 = scmp.ne.s32.totalorder %s1519_s1, %s2452_s11  ;;  %p2460_p6 = scmp.lt.s32.totalorder %s2452_s11, %s2452_s11 }
 0x64c   : > { %p2454_p1 = pnand %p2453_p2, %p2067_p3  ;;  %p2461_p12 = por %p2460_p6, %p2459_p5 }
 0x64e   : > { %p2455_p10 = pneg %p2454_p1 }
 0x650   : > { %p2462_p0 = pnand %p2461_p12, %p2455_p10 }
 0x652   : > { %2465 = shalt.err (!%p2462_p0)
}
 0x653   : > { %s3294_s10 = sld [smem:[#allocation41_spill]] }
 0x659   : > { %s2466_s26 = scalar_lea.hbm %s3294_s10, 32 }
 0x65a   : > { %p2467_p4 = scmp.ne.s32.totalorder %s3294_s10, %s2466_s26  ;;  %p2472_p9 = scmp.lt.u32.totalorder %s2466_s26, %s3294_s10 }
 0x65c   : > { %p2468_p8 = pnand %p2467_p4, %p2067_p3 }
 0x65e   : > { %p2469_p13 = pneg %p2468_p8 }
 0x660   : > { %p2474_p11 = pnand %p2472_p9, %p2469_p13 }
 0x662   : > { %2477 = shalt.err (!%p2474_p11)
}
 0x663   : > { %2020 = dma.vmem_to_hbm [thread:$0]  (%p2067_p3), %s1519_s1, 32, %s3294_s10, [#allocation8]  }
 0x664   : > { %2539 = dma.done.wait (%p2067_p3), [#allocation8], 32  }
 0x665   : > { %2541 = vsyncadd (%p2067_p3), [#allocation8], 4294967264 }
 0x666 PF: > { %s29_s23 = sadd.s32 1, %s2580_s23   ;;  %s3295_s6 = smov %s2865_s15 }
 0x667   : > { %p26_p7 = scmp.ge.s32.totalorder %s29_s23, 22   ;;  %s3296_s5 = sld [smem:[#allocation32_spill]] }
 0x668   : > { %s3297_s30 = sld [smem:[#allocation33_spill]]  ;;  %s3298_s13 = sld [smem:[#allocation34_spill]] }
 0x669   : > { %s3299_s15 = smov %s2548_s16  ;;  %s3300_s16 = smov %s2552_s17 }
 0x66a   : > { %s3301_s17 = smov %s3295_s6  ;;  %s3302_s18 = smov %s2568_s9 }
 0x66b   : > { %s3303_s19 = smov %s2572_s21  ;;  %s3304_s20 = smov %s2576_s22 }
 0x66c   :  { %28 = sbr.rel (!%p26_p7) target bundleno = 20 (0x14), region = 173 }
 0x66d   : > { %s3305_s9 = smov %s3296_s5 }
 0x66e   : > { %s3306_s21 = smov %s3297_s30  ;;  %s3307_s22 = smov %s3298_s13 }
 0x673   :  { %1531 = vsyncpa [#allocation7], 1 }
 0x674   :  { %1533 = vsyncpa [#allocation7 + $0x1], 1 }
 0x675   :  { %1534 = vsyncpa [#allocation10], 1 }
 0x676   :  { %1535 = vsyncpa [#allocation13], 1 }
 0x677   :  { %1536 = vsyncpa [#allocation16], 1 }
 0x678   :  { %1538 = vsyncpa [#allocation16 + $0x1], 1 }
 0x679   :  { %1539 = vsyncpa [#allocation19], 1 }
 0x67a   :  { %1540 = vsyncpa [#allocation8], 1 }
 0x67b   :  { %1542 = vsyncpa [#allocation8 + $0x1], 1 }

</bundles_post_ra>
